<compile_context>
chip_gen: v7x
topology: tpu7x:2x2x1
jax: 0.10.0
libtpu: 0.0.40
codegen_flags: <defaults>
</compile_context>

<pallas_src>
import jax
import jax.numpy as jnp
from jax.experimental import pallas as pl
from jax.experimental.pallas import tpu as pltpu

# Logical dims of the PyTorch MLP and their 128-padded counterparts.
_DIMS = (784, 520, 320, 240, 120, 10)


def _round_up(x, m):
    return (x + m - 1) // m * m


def _cdiv(a, b):
    return (a + b - 1) // b


_PAD_DIMS = tuple(_round_up(d, 128) for d in _DIMS)  # (896, 640, 384, 256, 128, 128)


def _mlp_kernel(x_ref,
                w1_ref, b1_ref,
                w2_ref, b2_ref,
                w3_ref, b3_ref,
                w4_ref, b4_ref,
                w5_ref, b5_ref,
                o_ref):
    """One batch-tile of the full MLP. Activations/weights bf16, accumulate f32."""

    def layer(h, w_ref, b_ref, relu):
        y = jnp.dot(h, w_ref[...], preferred_element_type=jnp.float32) + b_ref[...]
        if relu:
            y = jnp.maximum(y, 0.0).astype(jnp.bfloat16)
        return y

    h = x_ref[...]                       # (TB, 896) bf16
    h = layer(h, w1_ref, b1_ref, True)   # 896 -> 640
    h = layer(h, w2_ref, b2_ref, True)   # 640 -> 384
    h = layer(h, w3_ref, b3_ref, True)   # 384 -> 256
    h = layer(h, w4_ref, b4_ref, True)   # 256 -> 128
    o_ref[...] = layer(h, w5_ref, b5_ref, False)  # 128 -> 128 (first 10 lanes real)


def prepare_params(params):
    """Pad + cast parameters ONCE (outside the per-call forward path).

    Weights -> bf16, zero-padded to (pin, pout); biases -> f32 (1, pout).
    Zero padding keeps padded lanes exactly 0 through bias+ReLU, so it is a
    mathematical no-op.
    """
    padded = {}
    for li in range(5):
        din, dout = _DIMS[li], _DIMS[li + 1]
        pin, pout = _PAD_DIMS[li], _PAD_DIMS[li + 1]
        w = params[f"w{li + 1}"].astype(jnp.bfloat16)
        b = params[f"b{li + 1}"].astype(jnp.float32).reshape(1, dout)
        padded[f"w{li + 1}"] = jnp.pad(w, ((0, pin - din), (0, pout - dout)))
        padded[f"b{li + 1}"] = jnp.pad(b, ((0, 0), (0, pout - dout)))
    return padded


def _batch_tiling(B):
    """Choose (TB, B_pad) for the batch axis.

    - Multiples of 16 (bf16 packs 16 rows per sublane-packed vreg).
    - Tiny batches: a single grid step (no pointless splitting / overhead).
    - Larger batches: at least 2 grid steps so the "parallel" axis shards
      across v7x's two TensorCores; TB capped at 1024 rows to amortize the
      ~0.35 us per-step overhead while keeping VMEM modest on all chips.
    - Remainder padding bounded by < 16 * n_steps rows (no 2x FLOP blow-up).
    """
    bp = _round_up(max(B, 16), 16)
    max_tb = 1024
    if bp <= 256:
        n_steps = 1
    else:
        n_steps = max(2, _cdiv(bp, max_tb))
    tb = _round_up(_cdiv(bp, n_steps), 16)
    return tb, tb * n_steps


@jax.jit
def mlp_forward(x, padded_params):
    """x: (B, 1, 28, 28) or anything flattening to (-1, 784). Returns (B, 10) f32.

    `padded_params` must come from `prepare_params` (already padded / cast).
    """
    xf = x.reshape(-1, 784)
    B = xf.shape[0]
    TB, B_pad = _batch_tiling(B)

    # Single fused cast + pad (batch rows and feature lanes padded with zeros).
    xp = jnp.pad(xf.astype(jnp.bfloat16),
                 ((0, B_pad - B), (0, _PAD_DIMS[0] - 784)))

    operands = [xp]
    in_specs = [pl.BlockSpec((TB, _PAD_DIMS[0]), lambda i: (i, 0))]
    for li in range(5):
        pin, pout = _PAD_DIMS[li], _PAD_DIMS[li + 1]
        operands += [padded_params[f"w{li + 1}"], padded_params[f"b{li + 1}"]]
        # Constant index_map -> weights/biases DMA'd once, VMEM-resident
        # across all grid steps.
        in_specs.append(pl.BlockSpec((pin, pout), lambda i: (0, 0)))
        in_specs.append(pl.BlockSpec((1, pout), lambda i: (0, 0)))

    out_spec = pl.BlockSpec((TB, _PAD_DIMS[5]), lambda i: (i, 0))

    w_elems = sum(_PAD_DIMS[i] * _PAD_DIMS[i + 1] for i in range(5))
    b_elems = sum(_PAD_DIMS[i + 1] for i in range(5))
    cost = pl.CostEstimate(
        flops=2 * B_pad * w_elems,
        transcendentals=0,
        bytes_accessed=(B_pad * _PAD_DIMS[0] * 2          # x (bf16)
                        + w_elems * 2                      # weights (bf16)
                        + b_elems * 4                      # biases (f32)
                        + B_pad * _PAD_DIMS[5] * 4),       # output (f32)
    )

    out = pl.pallas_call(
        _mlp_kernel,
        out_shape=jax.ShapeDtypeStruct((B_pad, _PAD_DIMS[5]), jnp.float32),
        grid=(B_pad // TB,),
        in_specs=in_specs,
        out_specs=out_spec,
        compiler_params=pltpu.CompilerParams(
            dimension_semantics=("parallel",),
            vmem_limit_bytes=48 * 1024 * 1024,
        ),
        cost_estimate=cost,
    )(*operands)

    return out[:B, :10]


def init_params(key):
    """Deterministic init matching PyTorch nn.Linear shapes.

    PyTorch Linear(in, out) has weight (out, in) and computes y = x @ W.T + b.
    We store W.T directly, i.e. shape (in, out). Biases are (1, out).
    """
    params = {}
    for i in range(5):
        fan_in, fan_out = _DIMS[i], _DIMS[i + 1]
        key, kw, kb = jax.random.split(key, 3)
        bound = 1.0 / jnp.sqrt(jnp.float32(fan_in))
        params[f"w{i + 1}"] = jax.random.uniform(
            kw, (fan_in, fan_out), jnp.float32, -bound, bound)
        params[f"b{i + 1}"] = jax.random.uniform(
            kb, (1, fan_out), jnp.float32, -bound, bound)
    return params


def reference_forward(x, params):
    """Plain-JAX reference with matching bf16-weights / f32-accumulate numerics."""
    h = x.reshape(-1, 784).astype(jnp.bfloat16)
    for i in range(1, 5):
        w = params[f"w{i}"].astype(jnp.bfloat16)
        h = jnp.dot(h, w, preferred_element_type=jnp.float32) + params[f"b{i}"]
        h = jnp.maximum(h, 0.0).astype(jnp.bfloat16)
    w5 = params["w5"].astype(jnp.bfloat16)
    return jnp.dot(h, w5, preferred_element_type=jnp.float32) + params["b5"]


if __name__ == "__main__":
    key = jax.random.PRNGKey(0)
    k_x, k_x2, k_p = jax.random.split(key, 3)

    params = init_params(k_p)
    padded_params = prepare_params(params)   # pad/cast ONCE, outside the hot path
    padded_params = jax.tree_util.tree_map(jax.block_until_ready, padded_params)

    # Small MNIST-like batch: (B, C, H, W) = (8, 1, 28, 28) -> flattens to (8, 784).
    x = jax.random.normal(k_x, (8, 1, 28, 28), jnp.float32)
    out = jax.block_until_ready(mlp_forward(x, padded_params))
    ref = reference_forward(x, params)
    assert out.shape == (8, 10), out.shape
    assert jnp.allclose(out, ref, atol=1e-2, rtol=1e-2), "mismatch vs reference (B=8)"

    # A second, modestly larger batch exercises the multi-step (2-core-friendly)
    # grid path and the remainder-padding logic.
    x2 = jax.random.normal(k_x2, (300, 1, 28, 28), jnp.float32)
    out2 = jax.block_until_ready(mlp_forward(x2, padded_params))
    ref2 = reference_forward(x2, params)
    assert out2.shape == (300, 10), out2.shape
    assert jnp.allclose(out2, ref2, atol=1e-2, rtol=1e-2), "mismatch vs reference (B=300)"

    print("KERNEL_OK")
</pallas_src>

<mosaic_0001>
module attributes {stable_mosaic.version = 11 : i64} {
  func.func @_mlp_kernel(%arg0: i32, %arg1: memref<16x896xbf16, #tpu.memory_space<vmem>>, %arg2: memref<896x640xbf16, #tpu.memory_space<vmem>>, %arg3: memref<1x640xf32, #tpu.memory_space<vmem>>, %arg4: memref<640x384xbf16, #tpu.memory_space<vmem>>, %arg5: memref<1x384xf32, #tpu.memory_space<vmem>>, %arg6: memref<384x256xbf16, #tpu.memory_space<vmem>>, %arg7: memref<1x256xf32, #tpu.memory_space<vmem>>, %arg8: memref<256x128xbf16, #tpu.memory_space<vmem>>, %arg9: memref<1x128xf32, #tpu.memory_space<vmem>>, %arg10: memref<128x128xbf16, #tpu.memory_space<vmem>>, %arg11: memref<1x128xf32, #tpu.memory_space<vmem>>, %arg12: memref<16x128xf32, #tpu.memory_space<vmem>>) attributes {dimension_semantics = [#tpu.dimension_semantics<parallel>], iteration_bounds = array<i64: 1>, scalar_prefetch = 0 : i64, scratch_operands = 0 : i64, tpu.core_type = #tpu.core_type<tc>, window_params = [{transform_indices = @transform_0, window_bounds = array<i64: 16, 896>}, {pipeline_mode = #tpu.pipeline_mode<synchronous>, transform_indices = @transform_1, window_bounds = array<i64: 896, 640>}, {pipeline_mode = #tpu.pipeline_mode<synchronous>, transform_indices = @transform_2, window_bounds = array<i64: 1, 640>}, {pipeline_mode = #tpu.pipeline_mode<synchronous>, transform_indices = @transform_3, window_bounds = array<i64: 640, 384>}, {pipeline_mode = #tpu.pipeline_mode<synchronous>, transform_indices = @transform_4, window_bounds = array<i64: 1, 384>}, {pipeline_mode = #tpu.pipeline_mode<synchronous>, transform_indices = @transform_5, window_bounds = array<i64: 384, 256>}, {pipeline_mode = #tpu.pipeline_mode<synchronous>, transform_indices = @transform_6, window_bounds = array<i64: 1, 256>}, {pipeline_mode = #tpu.pipeline_mode<synchronous>, transform_indices = @transform_7, window_bounds = array<i64: 256, 128>}, {pipeline_mode = #tpu.pipeline_mode<synchronous>, transform_indices = @transform_8, window_bounds = array<i64: 1, 128>}, {pipeline_mode = #tpu.pipeline_mode<synchronous>, transform_indices = @transform_9, window_bounds = array<i64: 128, 128>}, {pipeline_mode = #tpu.pipeline_mode<synchronous>, transform_indices = @transform_10, window_bounds = array<i64: 1, 128>}, {transform_indices = @transform_11, window_bounds = array<i64: 16, 128>}]} {
    %c0 = arith.constant 0 : index
    %c0_0 = arith.constant 0 : index
    %0 = vector.load %arg1[%c0, %c0_0] : memref<16x896xbf16, #tpu.memory_space<vmem>>, vector<16x896xbf16>
    %c0_1 = arith.constant 0 : index
    %c0_2 = arith.constant 0 : index
    %1 = vector.load %arg2[%c0_1, %c0_2] : memref<896x640xbf16, #tpu.memory_space<vmem>>, vector<896x640xbf16>
    %cst = arith.constant dense<0.000000e+00> : vector<16x640xf32>
    %2 = tpu.matmul %0, %1, %cst {dimension_numbers = #tpu.dot_dimension_numbers<[1], [0], [0], [1], [0, 0, 1, 1], [], []>} : vector<16x896xbf16>, vector<896x640xbf16>, vector<16x640xf32> -> vector<16x640xf32>
    %c0_3 = arith.constant 0 : index
    %c0_4 = arith.constant 0 : index
    %3 = vector.load %arg3[%c0_3, %c0_4] : memref<1x640xf32, #tpu.memory_space<vmem>>, vector<1x640xf32>
    %4 = vector.broadcast %3 : vector<1x640xf32> to vector<16x640xf32>
    %5 = arith.addf %2, %4 : vector<16x640xf32>
    %cst_5 = arith.constant 0.000000e+00 : f32
    %6 = vector.broadcast %cst_5 : f32 to vector<16x640xf32>
    %7 = arith.maximumf %5, %6 : vector<16x640xf32>
    %8 = arith.truncf %7 : vector<16x640xf32> to vector<16x640xbf16>
    %c0_6 = arith.constant 0 : index
    %c0_7 = arith.constant 0 : index
    %9 = vector.load %arg4[%c0_6, %c0_7] : memref<640x384xbf16, #tpu.memory_space<vmem>>, vector<640x384xbf16>
    %cst_8 = arith.constant dense<0.000000e+00> : vector<16x384xf32>
    %10 = tpu.matmul %8, %9, %cst_8 {dimension_numbers = #tpu.dot_dimension_numbers<[1], [0], [0], [1], [0, 0, 1, 1], [], []>} : vector<16x640xbf16>, vector<640x384xbf16>, vector<16x384xf32> -> vector<16x384xf32>
    %c0_9 = arith.constant 0 : index
    %c0_10 = arith.constant 0 : index
    %11 = vector.load %arg5[%c0_9, %c0_10] : memref<1x384xf32, #tpu.memory_space<vmem>>, vector<1x384xf32>
    %12 = vector.broadcast %11 : vector<1x384xf32> to vector<16x384xf32>
    %13 = arith.addf %10, %12 : vector<16x384xf32>
    %cst_11 = arith.constant 0.000000e+00 : f32
    %14 = vector.broadcast %cst_11 : f32 to vector<16x384xf32>
    %15 = arith.maximumf %13, %14 : vector<16x384xf32>
    %16 = arith.truncf %15 : vector<16x384xf32> to vector<16x384xbf16>
    %c0_12 = arith.constant 0 : index
    %c0_13 = arith.constant 0 : index
    %17 = vector.load %arg6[%c0_12, %c0_13] : memref<384x256xbf16, #tpu.memory_space<vmem>>, vector<384x256xbf16>
    %cst_14 = arith.constant dense<0.000000e+00> : vector<16x256xf32>
    %18 = tpu.matmul %16, %17, %cst_14 {dimension_numbers = #tpu.dot_dimension_numbers<[1], [0], [0], [1], [0, 0, 1, 1], [], []>} : vector<16x384xbf16>, vector<384x256xbf16>, vector<16x256xf32> -> vector<16x256xf32>
    %c0_15 = arith.constant 0 : index
    %c0_16 = arith.constant 0 : index
    %19 = vector.load %arg7[%c0_15, %c0_16] : memref<1x256xf32, #tpu.memory_space<vmem>>, vector<1x256xf32>
    %20 = vector.broadcast %19 : vector<1x256xf32> to vector<16x256xf32>
    %21 = arith.addf %18, %20 : vector<16x256xf32>
    %cst_17 = arith.constant 0.000000e+00 : f32
    %22 = vector.broadcast %cst_17 : f32 to vector<16x256xf32>
    %23 = arith.maximumf %21, %22 : vector<16x256xf32>
    %24 = arith.truncf %23 : vector<16x256xf32> to vector<16x256xbf16>
    %c0_18 = arith.constant 0 : index
    %c0_19 = arith.constant 0 : index
    %25 = vector.load %arg8[%c0_18, %c0_19] : memref<256x128xbf16, #tpu.memory_space<vmem>>, vector<256x128xbf16>
    %cst_20 = arith.constant dense<0.000000e+00> : vector<16x128xf32>
    %26 = tpu.matmul %24, %25, %cst_20 {dimension_numbers = #tpu.dot_dimension_numbers<[1], [0], [0], [1], [0, 0, 1, 1], [], []>} : vector<16x256xbf16>, vector<256x128xbf16>, vector<16x128xf32> -> vector<16x128xf32>
    %c0_21 = arith.constant 0 : index
    %c0_22 = arith.constant 0 : index
    %27 = vector.load %arg9[%c0_21, %c0_22] : memref<1x128xf32, #tpu.memory_space<vmem>>, vector<1x128xf32>
    %28 = vector.broadcast %27 : vector<1x128xf32> to vector<16x128xf32>
    %29 = arith.addf %26, %28 : vector<16x128xf32>
    %cst_23 = arith.constant 0.000000e+00 : f32
    %30 = vector.broadcast %cst_23 : f32 to vector<16x128xf32>
    %31 = arith.maximumf %29, %30 : vector<16x128xf32>
    %32 = arith.truncf %31 : vector<16x128xf32> to vector<16x128xbf16>
    %c0_24 = arith.constant 0 : index
    %c0_25 = arith.constant 0 : index
    %33 = vector.load %arg10[%c0_24, %c0_25] : memref<128x128xbf16, #tpu.memory_space<vmem>>, vector<128x128xbf16>
    %cst_26 = arith.constant dense<0.000000e+00> : vector<16x128xf32>
    %34 = tpu.matmul %32, %33, %cst_26 {dimension_numbers = #tpu.dot_dimension_numbers<[1], [0], [0], [1], [0, 0, 1, 1], [], []>} : vector<16x128xbf16>, vector<128x128xbf16>, vector<16x128xf32> -> vector<16x128xf32>
    %c0_27 = arith.constant 0 : index
    %c0_28 = arith.constant 0 : index
    %35 = vector.load %arg11[%c0_27, %c0_28] : memref<1x128xf32, #tpu.memory_space<vmem>>, vector<1x128xf32>
    %36 = vector.broadcast %35 : vector<1x128xf32> to vector<16x128xf32>
    %37 = arith.addf %34, %36 : vector<16x128xf32>
    %c0_29 = arith.constant 0 : index
    %c0_30 = arith.constant 0 : index
    %38 = vector.load %arg12[%c0_29, %c0_30] : memref<16x128xf32, #tpu.memory_space<vmem>>, vector<16x128xf32>
    tpu.vector_store %arg12[%c0_29, %c0_30], %37 {strides = array<i32>} : memref<16x128xf32, #tpu.memory_space<vmem>>, vector<16x128xf32>,
    return
  }
  func.func @transform_0(%arg0: i32) -> (i32, i32) {
    %c0_i32 = arith.constant 0 : i32
    %c0_i32_0 = arith.constant 0 : i32
    return %arg0, %c0_i32 : i32, i32
  }
  func.func @transform_1(%arg0: i32) -> (i32, i32) {
    %c0_i32 = arith.constant 0 : i32
    %c0_i32_0 = arith.constant 0 : i32
    %c0_i32_1 = arith.constant 0 : i32
    return %c0_i32, %c0_i32_0 : i32, i32
  }
  func.func @transform_2(%arg0: i32) -> (i32, i32) {
    %c0_i32 = arith.constant 0 : i32
    %c0_i32_0 = arith.constant 0 : i32
    %c0_i32_1 = arith.constant 0 : i32
    return %c0_i32, %c0_i32_0 : i32, i32
  }
  func.func @transform_3(%arg0: i32) -> (i32, i32) {
    %c0_i32 = arith.constant 0 : i32
    %c0_i32_0 = arith.constant 0 : i32
    %c0_i32_1 = arith.constant 0 : i32
    return %c0_i32, %c0_i32_0 : i32, i32
  }
  func.func @transform_4(%arg0: i32) -> (i32, i32) {
    %c0_i32 = arith.constant 0 : i32
    %c0_i32_0 = arith.constant 0 : i32
    %c0_i32_1 = arith.constant 0 : i32
    return %c0_i32, %c0_i32_0 : i32, i32
  }
  func.func @transform_5(%arg0: i32) -> (i32, i32) {
    %c0_i32 = arith.constant 0 : i32
    %c0_i32_0 = arith.constant 0 : i32
    %c0_i32_1 = arith.constant 0 : i32
    return %c0_i32, %c0_i32_0 : i32, i32
  }
  func.func @transform_6(%arg0: i32) -> (i32, i32) {
    %c0_i32 = arith.constant 0 : i32
    %c0_i32_0 = arith.constant 0 : i32
    %c0_i32_1 = arith.constant 0 : i32
    return %c0_i32, %c0_i32_0 : i32, i32
  }
  func.func @transform_7(%arg0: i32) -> (i32, i32) {
    %c0_i32 = arith.constant 0 : i32
    %c0_i32_0 = arith.constant 0 : i32
    %c0_i32_1 = arith.constant 0 : i32
    return %c0_i32, %c0_i32_0 : i32, i32
  }
  func.func @transform_8(%arg0: i32) -> (i32, i32) {
    %c0_i32 = arith.constant 0 : i32
    %c0_i32_0 = arith.constant 0 : i32
    %c0_i32_1 = arith.constant 0 : i32
    return %c0_i32, %c0_i32_0 : i32, i32
  }
  func.func @transform_9(%arg0: i32) -> (i32, i32) {
    %c0_i32 = arith.constant 0 : i32
    %c0_i32_0 = arith.constant 0 : i32
    %c0_i32_1 = arith.constant 0 : i32
    return %c0_i32, %c0_i32_0 : i32, i32
  }
  func.func @transform_10(%arg0: i32) -> (i32, i32) {
    %c0_i32 = arith.constant 0 : i32
    %c0_i32_0 = arith.constant 0 : i32
    %c0_i32_1 = arith.constant 0 : i32
    return %c0_i32, %c0_i32_0 : i32, i32
  }
  func.func @transform_11(%arg0: i32) -> (i32, i32) {
    %c0_i32 = arith.constant 0 : i32
    %c0_i32_0 = arith.constant 0 : i32
    return %arg0, %c0_i32 : i32, i32
  }
}

</mosaic_0001>

<bundles_post_ra>
// kernel: mlp_forward.1
= control target key start
LH: loop header
LB: loop body
LE: loop exit
PB: predicated region body
PF: predicated region fallthrough
CT: control target
= control target key end

     0   :  { %16 = vsyncpa [#allocation3], 0  ;;  %s6317_s0 = inlined_call_operand.vmem [shape: bf16[16,896], index: 0, kind: input, shape index: {}]   ;;  %s6318_s1 = inlined_call_operand.hbm [shape: bf16[896,640], index: 1, kind: input, shape index: {}]   ;;  %s6319_s2 = inlined_call_operand.hbm [shape: f32[1,640], index: 2, kind: input, shape index: {}]   ;;  %s6320_s3 = inlined_call_operand.hbm [shape: bf16[640,384], index: 3, kind: input, shape index: {}]   ;;  %s6321_s4 = inlined_call_operand.hbm [shape: f32[1,384], index: 4, kind: input, shape index: {}]   ;;  %s6322_s5 = inlined_call_operand.hbm [shape: bf16[384,256], index: 5, kind: input, shape index: {}]   ;;  %s6323_s6 = inlined_call_operand.hbm [shape: f32[1,256], index: 6, kind: input, shape index: {}]   ;;  %s6324_s7 = inlined_call_operand.hbm [shape: bf16[256,128], index: 7, kind: input, shape index: {}]   ;;  %s6325_s8 = inlined_call_operand.hbm [shape: f32[1,128], index: 8, kind: input, shape index: {}]   ;;  %s6326_s9 = inlined_call_operand.hbm [shape: bf16[128,128], index: 9, kind: input, shape index: {}]   ;;  %s6327_s10 = inlined_call_operand.hbm [shape: f32[1,128], index: 10, kind: input, shape index: {}]   ;;  %s6328_s11 = inlined_call_operand.vmem [shape: f32[16,128], index: 11, kind: output, shape index: {}]  }
   0x1   :  { %17 = vsyncpa [#allocation5], 0 }
   0x2   :  { %18 = vsyncpa [#allocation8], 0 }
   0x3   :  { %19 = vsyncpa [#allocation11], 0 }
   0x4   :  { %20 = vsyncpa [#allocation14], 0 }
   0x5   :  { %21 = vsyncpa [#allocation17], 0  ;;  %s5992_s17 = smov [#allocation4]   ;;  %s5993_s19 = smov [#allocation7]  }
   0x6   :  { %s42_s18 = sshll.u32 %s5992_s17, 4  ;;  %s64_s20 = sshll.u32 %s5993_s19, 4  ;;  %s43_s18 = int_to_ptr.vmem [resolvable:$true] %s42_s18  ;;  %s65_s20 = int_to_ptr.vmem [resolvable:$true] %s64_s20 }
   0x7   :  { %s5760_s23 = scalar_lea.hbm %s6319_s2, 80 }
   0x8   :  { %p5761_p0 = scmp.ne.s32.totalorder %s6319_s2, %s5760_s23  ;;  %p5764_p1 = scmp.lt.u32.totalorder %s5760_s23, %s6319_s2 }
   0xa   :  { %p5766_p2 = pnand %p5764_p1, %p5761_p0 }
   0xc   :  { %5769 = shalt.err (!%p5766_p2)
}
   0xd   :  { %s5770_s28 = scalar_lea.vmem %s43_s18, 80  ;;  %s5774_s29 = scalar_lea.vmem %s43_s18, 96 }
   0xe   :  { %p5771_p3 = scmp.ne.s32.totalorder %s43_s18, %s5770_s28  ;;  %p5775_p4 = scmp.lt.s32.totalorder %s43_s18, %s43_s18 }
   0xf   :  { %p5776_p5 = scmp.lt.s32.totalorder %s5774_s29, %s5770_s28 }
  0x11   :  { %p5777_p6 = por %p5776_p5, %p5775_p4 }
  0x13   :  { %p5778_p7 = pnand %p5777_p6, %p5771_p3 }
  0x15   :  { %5781 = shalt.err (!%p5778_p7)
}
  0x16   :  { %45 = dma.hbm_to_vmem [thread:$0]  %s6319_s2, 80, %s43_s18, [#allocation5]  }
  0x17   :  { %s5782_s15 = scalar_lea.hbm %s6321_s4, 48 }
  0x18   :  { %p5783_p8 = scmp.ne.s32.totalorder %s6321_s4, %s5782_s15  ;;  %p5786_p9 = scmp.lt.u32.totalorder %s5782_s15, %s6321_s4 }
  0x1a   :  { %p5788_p10 = pnand %p5786_p9, %p5783_p8 }
  0x1c   :  { %5791 = shalt.err (!%p5788_p10)
}
  0x1d   :  { %s5792_s22 = scalar_lea.vmem %s65_s20, 48  ;;  %s5796_s23 = scalar_lea.vmem %s65_s20, 64 }
  0x1e   :  { %p5793_p11 = scmp.ne.s32.totalorder %s65_s20, %s5792_s22  ;;  %p5797_p12 = scmp.lt.s32.totalorder %s65_s20, %s65_s20 }
  0x1f   :  { %p5798_p13 = scmp.lt.s32.totalorder %s5796_s23, %s5792_s22 }
  0x21   :  { %p5799_p0 = por %p5798_p13, %p5797_p12 }
  0x23   :  { %p5800_p1 = pnand %p5799_p0, %p5793_p11 }
  0x25   :  { %5803 = shalt.err (!%p5800_p1)
}
  0x26   :  { %67 = dma.hbm_to_vmem [thread:$0]  %s6321_s4, 48, %s65_s20, [#allocation8]  }
  0x27   :  { %s5994_s24 = smov [#allocation10]   ;;  %s5995_s26 = smov [#allocation13]  }
  0x28   :  { %s86_s25 = sshll.u32 %s5994_s24, 4  ;;  %s108_s27 = sshll.u32 %s5995_s26, 4  ;;  %s87_s25 = int_to_ptr.vmem [resolvable:$true] %s86_s25  ;;  %s109_s27 = int_to_ptr.vmem [resolvable:$true] %s108_s27 }
  0x29   :  { %s5804_s30 = scalar_lea.hbm %s6323_s6, 32 }
  0x2a   :  { %p5805_p2 = scmp.ne.s32.totalorder %s6323_s6, %s5804_s30  ;;  %p5808_p3 = scmp.lt.u32.totalorder %s5804_s30, %s6323_s6 }
  0x2c   :  { %p5810_p4 = pnand %p5808_p3, %p5805_p2 }
  0x2e   :  { %5813 = shalt.err (!%p5810_p4)
}
  0x2f   :  { %s5814_s4 = scalar_lea.vmem %s87_s25, 32  ;;  %p5819_p6 = scmp.lt.s32.totalorder %s87_s25, %s87_s25 }
  0x30   :  { %p5815_p5 = scmp.ne.s32.totalorder %s87_s25, %s5814_s4  ;;  %p5820_p7 = scmp.lt.s32.totalorder %s5814_s4, %s5814_s4 }
  0x32   :  { %p5821_p8 = por %p5820_p7, %p5819_p6 }
  0x34   :  { %p5822_p9 = pnand %p5821_p8, %p5815_p5 }
  0x36   :  { %5825 = shalt.err (!%p5822_p9)
}
  0x37   :  { %89 = dma.hbm_to_vmem [thread:$0]  %s6323_s6, 32, %s87_s25, [#allocation11]  }
  0x38   :  { %s5826_s21 = scalar_lea.hbm %s6325_s8, 16 }
  0x39   :  { %p5827_p10 = scmp.ne.s32.totalorder %s6325_s8, %s5826_s21  ;;  %p5830_p11 = scmp.lt.u32.totalorder %s5826_s21, %s6325_s8 }
  0x3b   :  { %p5832_p12 = pnand %p5830_p11, %p5827_p10 }
  0x3d   :  { %5835 = shalt.err (!%p5832_p12)
}
  0x3e   :  { %s5836_s24 = scalar_lea.vmem %s109_s27, 16  ;;  %s5840_s26 = scalar_lea.vmem %s109_s27, 32 }
  0x3f   :  { %p5837_p13 = scmp.ne.s32.totalorder %s109_s27, %s5836_s24  ;;  %p5841_p0 = scmp.lt.s32.totalorder %s109_s27, %s109_s27 }
  0x40   :  { %p5842_p1 = scmp.lt.s32.totalorder %s5840_s26, %s5836_s24 }
  0x42   :  { %p5843_p2 = por %p5842_p1, %p5841_p0 }
  0x44   :  { %p5844_p3 = pnand %p5843_p2, %p5837_p13 }
  0x46   :  { %5847 = shalt.err (!%p5844_p3)
}
  0x47   :  { %111 = dma.hbm_to_vmem [thread:$0]  %s6325_s8, 16, %s109_s27, [#allocation14]  }
  0x48   :  { %s5996_s28 = smov [#allocation2]   ;;  %s5848_s13 = scalar_lea.hbm %s6318_s1, 35840 }
  0x49   :  { %s29_s29 = sshll.u32 %s5996_s28, 4  ;;  %p5849_p4 = scmp.ne.s32.totalorder %s6318_s1, %s5848_s13  ;;  %s30_s29 = int_to_ptr.vmem [resolvable:$true] %s29_s29 }
  0x4a   :  { %p5852_p5 = scmp.lt.u32.totalorder %s5848_s13, %s6318_s1 }
  0x4c   :  { %p5854_p6 = pnand %p5852_p5, %p5849_p4 }
  0x4e   :  { %5857 = shalt.err (!%p5854_p6)
}
  0x4f   :  { %s5858_s16 = scalar_lea.vmem %s30_s29, 35840  ;;  %p5863_p8 = scmp.lt.s32.totalorder %s30_s29, %s30_s29 }
  0x50   :  { %p5859_p7 = scmp.ne.s32.totalorder %s30_s29, %s5858_s16  ;;  %p5864_p9 = scmp.lt.s32.totalorder %s5858_s16, %s5858_s16 }
  0x52   :  { %p5865_p10 = por %p5864_p9, %p5863_p8 }
  0x54   :  { %p5866_p11 = pnand %p5865_p10, %p5859_p7 }
  0x56   :  { %5869 = shalt.err (!%p5866_p11)
}
  0x57   :  { %s5997_s8 = smov 320   ;;  %s5998_s27 = smov 20  }
  0x58   :  { %35 = dma.hbm_to_vmem [thread:$0]  %s6318_s1, 35840, %s30_s29, [#allocation3], %s5997_s8, %s5997_s8, %s5998_s27  }
  0x59   :  { %s5999_s21 = smov [#allocation6]   ;;  %s5870_s18 = scalar_lea.hbm %s6320_s3, 15360 }
  0x5a   :  { %s51_s22 = sshll.u32 %s5999_s21, 4  ;;  %p5871_p12 = scmp.ne.s32.totalorder %s6320_s3, %s5870_s18  ;;  %s52_s22 = int_to_ptr.vmem [resolvable:$true] %s51_s22 }
  0x5b   :  { %p5874_p13 = scmp.lt.u32.totalorder %s5870_s18, %s6320_s3 }
  0x5d   :  { %p5876_p0 = pnand %p5874_p13, %p5871_p12 }
  0x5f   :  { %5879 = shalt.err (!%p5876_p0)
}
  0x60   :  { %s5880_s28 = scalar_lea.vmem %s52_s22, 15360  ;;  %p5885_p2 = scmp.lt.s32.totalorder %s52_s22, %s52_s22 }
  0x61   :  { %p5881_p1 = scmp.ne.s32.totalorder %s52_s22, %s5880_s28  ;;  %p5886_p3 = scmp.lt.s32.totalorder %s5880_s28, %s5880_s28 }
  0x63   :  { %p5887_p4 = por %p5886_p3, %p5885_p2 }
  0x65   :  { %p5888_p5 = pnand %p5887_p4, %p5881_p1 }
  0x67   :  { %5891 = shalt.err (!%p5888_p5)
}
  0x68   :  { %s6000_s1 = smov 192   ;;  %s6001_s29 = smov 12  }
  0x69   :  { %57 = dma.hbm_to_vmem [thread:$0]  %s6320_s3, 15360, %s52_s22, [#allocation5], %s6000_s1, %s6000_s1, %s6001_s29  }
  0x6a   :  { %s6002_s13 = smov [#allocation9]   ;;  %s5892_s20 = scalar_lea.hbm %s6322_s5, 6144 }
  0x6b   :  { %s73_s14 = sshll.u32 %s6002_s13, 4  ;;  %p5893_p6 = scmp.ne.s32.totalorder %s6322_s5, %s5892_s20  ;;  %s74_s14 = int_to_ptr.vmem [resolvable:$true] %s73_s14 }
  0x6c   :  { %p5896_p7 = scmp.lt.u32.totalorder %s5892_s20, %s6322_s5 }
  0x6e   :  { %p5898_p8 = pnand %p5896_p7, %p5893_p6 }
  0x70   :  { %5901 = shalt.err (!%p5898_p8)
}
  0x71   :  { %s5902_s19 = scalar_lea.vmem %s74_s14, 6144  ;;  %p5907_p10 = scmp.lt.s32.totalorder %s74_s14, %s74_s14 }
  0x72   :  { %p5903_p9 = scmp.ne.s32.totalorder %s74_s14, %s5902_s19  ;;  %p5908_p11 = scmp.lt.s32.totalorder %s5902_s19, %s5902_s19 }
  0x74   :  { %p5909_p12 = por %p5908_p11, %p5907_p10 }
  0x76   :  { %p5910_p13 = pnand %p5909_p12, %p5903_p9 }
  0x78   :  { %5913 = shalt.err (!%p5910_p13)
}
  0x79   :  { %s6003_s3 = smov 128   ;;  %s6004_s21 = smov 8  }
  0x7a   :  { %79 = dma.hbm_to_vmem [thread:$0]  %s6322_s5, 6144, %s74_s14, [#allocation8], %s6003_s3, %s6003_s3, %s6004_s21  }
  0x7b   :  { %s6005_s2 = smov [#allocation12]   ;;  %s5914_s6 = scalar_lea.hbm %s6324_s7, 2048 }
  0x7c   :  { %s95_s18 = sshll.u32 %s6005_s2, 4  ;;  %p5915_p0 = scmp.ne.s32.totalorder %s6324_s7, %s5914_s6  ;;  %s96_s18 = int_to_ptr.vmem [resolvable:$true] %s95_s18 }
  0x7d   :  { %p5918_p1 = scmp.lt.u32.totalorder %s5914_s6, %s6324_s7 }
  0x7f   :  { %p5920_p2 = pnand %p5918_p1, %p5915_p0 }
  0x81   :  { %5923 = shalt.err (!%p5920_p2)
}
  0x82   :  { %s5924_s30 = scalar_lea.vmem %s96_s18, 2048  ;;  %p5929_p4 = scmp.lt.s32.totalorder %s96_s18, %s96_s18 }
  0x83   :  { %p5925_p3 = scmp.ne.s32.totalorder %s96_s18, %s5924_s30  ;;  %p5930_p5 = scmp.lt.s32.totalorder %s5924_s30, %s5924_s30 }
  0x85   :  { %p5931_p6 = por %p5930_p5, %p5929_p4 }
  0x87   :  { %p5932_p7 = pnand %p5931_p6, %p5925_p3 }
  0x89   :  { %5935 = shalt.err (!%p5932_p7)
}
  0x8a   :  { %s6006_s5 = smov 64   ;;  %s6007_s12 = smov 4  }
  0x8b   :  { %101 = dma.hbm_to_vmem [thread:$0]  %s6324_s7, 2048, %s96_s18, [#allocation11], %s6006_s5, %s6006_s5, %s6007_s12  }
  0x8c   :  { %s6008_s15 = smov [#allocation15]   ;;  %s6009_s20 = smov [#allocation16]  }
  0x8d   :  { %s117_s4 = sshll.u32 %s6008_s15, 4  ;;  %s130_s16 = sshll.u32 %s6009_s20, 4  ;;  %s118_s4 = int_to_ptr.vmem [resolvable:$true] %s117_s4  ;;  %s131_s16 = int_to_ptr.vmem [resolvable:$true] %s130_s16 }
  0x8e   :  { %s5936_s17 = scalar_lea.hbm %s6326_s9, 1024 }
  0x8f   :  { %p5937_p8 = scmp.ne.s32.totalorder %s6326_s9, %s5936_s17  ;;  %p5940_p9 = scmp.lt.u32.totalorder %s5936_s17, %s6326_s9 }
  0x91   :  { %p5942_p10 = pnand %p5940_p9, %p5937_p8 }
  0x93   :  { %5945 = shalt.err (!%p5942_p10)
}
  0x94   :  { %s5946_s7 = scalar_lea.vmem %s118_s4, 1024  ;;  %p5951_p12 = scmp.lt.s32.totalorder %s118_s4, %s118_s4 }
  0x95   :  { %p5947_p11 = scmp.ne.s32.totalorder %s118_s4, %s5946_s7  ;;  %p5952_p13 = scmp.lt.s32.totalorder %s5946_s7, %s5946_s7 }
  0x97   :  { %p5953_p0 = por %p5952_p13, %p5951_p12 }
  0x99   :  { %p5954_p1 = pnand %p5953_p0, %p5947_p11 }
  0x9b   :  { %5957 = shalt.err (!%p5954_p1)
}
  0x9c   :  { %123 = dma.hbm_to_vmem [thread:$0]  %s6326_s9, 1024, %s118_s4, [#allocation14], %s6006_s5, %s6006_s5, %s6007_s12  }
  0x9d   :  { %s5958_s26 = scalar_lea.hbm %s6327_s10, 16 }
  0x9e   :  { %p5959_p2 = scmp.ne.s32.totalorder %s6327_s10, %s5958_s26  ;;  %p5962_p3 = scmp.lt.u32.totalorder %s5958_s26, %s6327_s10 }
  0xa0   :  { %p5964_p4 = pnand %p5962_p3, %p5959_p2 }
  0xa2   :  { %5967 = shalt.err (!%p5964_p4)
}
  0xa3   :  { %s5968_s29 = scalar_lea.vmem %s131_s16, 16  ;;  %s5972_s30 = scalar_lea.vmem %s131_s16, 32 }
  0xa4   :  { %p5969_p5 = scmp.ne.s32.totalorder %s131_s16, %s5968_s29  ;;  %p5973_p6 = scmp.lt.s32.totalorder %s131_s16, %s131_s16 }
  0xa5   :  { %p5974_p7 = scmp.lt.s32.totalorder %s5972_s30, %s5968_s29 }
  0xa7   :  { %p5975_p8 = por %p5974_p7, %p5973_p6 }
  0xa9   :  { %p5976_p9 = pnand %p5975_p8, %p5969_p5 }
  0xab   :  { %5979 = shalt.err (!%p5976_p9)
}
  0xac   :  { %133 = dma.hbm_to_vmem [thread:$0]  %s6327_s10, 16, %s131_s16, [#allocation17]  }
  0xad   :  { %5980 = dma.done.wait [#allocation3], 35840  }
  0xae   :  { %5981 = vsyncadd [#allocation3], 4294931456 }
  0xaf   :  { %5982 = dma.done.wait [#allocation5], 15440  }
  0xb0   :  { %5983 = vsyncadd [#allocation5], 4294951856 }
  0xb1   :  { %5984 = dma.done.wait [#allocation8], 6192  }
  0xb2   :  { %5985 = vsyncadd [#allocation8], 4294961104 }
  0xb3   :  { %5986 = dma.done.wait [#allocation11], 2080  }
  0xb4   :  { %5987 = vsyncadd [#allocation11], 4294965216 }
  0xb5   :  { %5988 = dma.done.wait [#allocation14], 1040  }
  0xb6   :  { %5989 = vsyncadd [#allocation14], 4294966256 }
  0xb7   :  { %5990 = dma.done.wait [#allocation17], 16  }
  0xb8   :  { %5991 = vsyncadd [#allocation17], 4294967280  ;;  %v5097_v0 = vld [vmem:[#allocation2 + $0x4] ss:$20 sps:$4 sm:$0xff]   ;;  %v5099_v1 = vld [vmem:[#allocation2 + $0xc] ss:$20 sps:$4 sm:$0xff]  }
  0xb9   :  { %2028 = vmatprep.subr.bf16.mxu0 %v5097_v0  ;;  %v5101_v2 = vld [vmem:[#allocation2] ss:$20 sps:$4 sm:$0xff]   ;;  %v5102_v3 = vld [vmem:[#allocation2 + $0x8] ss:$20 sps:$4 sm:$0xff]   ;;  %2200 = vmatprep.subr.bf16.mxu1 %v5099_v1  ;;  %v5108_v7 = vld [vmem:[#allocation2 + $0x30] ss:$20 sps:$4 sm:$0xff]  }
  0xba   :  { %v5103_v4 = vld [vmem:[#allocation2 + $0x2c] ss:$20 sps:$4 sm:$0xff]   ;;  %2029 = vmatpush1.bf16.msra.mxu0 %v5101_v2  ;;  %2201 = vmatpush1.bf16.msra.mxu1 %v5102_v3  ;;  %v5105_v5 = vld [vmem:[#allocation2 + $0x34] ss:$20 sps:$4 sm:$0xff]   ;;  %v5111_v9 = vld [vmem:[#allocation2 + $0x5c] ss:$20 sps:$4 sm:$0xff]  }
  0xbb   :  { %v5107_v6 = vld [vmem:[#allocation2 + $0x28] ss:$20 sps:$4 sm:$0xff]   ;;  %2030 = vmatprep.subr.bf16.mxu0 %v5103_v4  ;;  %2202 = vmatprep.subr.bf16.mxu1 %v5105_v5  ;;  %v5113_v10 = vld [vmem:[#allocation2 + $0x50] ss:$20 sps:$4 sm:$0xff]   ;;  %v5114_v11 = vld [vmem:[#allocation2 + $0x58] ss:$20 sps:$4 sm:$0xff]  }
  0xbc   :  { %v5109_v8 = vld [vmem:[#allocation2 + $0x54] ss:$20 sps:$4 sm:$0xff]   ;;  %v5115_v12 = vld [vmem:[#allocation2 + $0x7c] ss:$20 sps:$4 sm:$0xff]   ;;  %v5117_v13 = vld [vmem:[#allocation2 + $0x84] ss:$20 sps:$4 sm:$0xff]  }
  0xbd   :  { %v5119_v14 = vld [vmem:[#allocation2 + $0x78] ss:$20 sps:$4 sm:$0xff]   ;;  %v5120_v15 = vld [vmem:[#allocation2 + $0x80] ss:$20 sps:$4 sm:$0xff]   ;;  %v5126_v19 = vld [vmem:[#allocation2 + $0xa8] ss:$20 sps:$4 sm:$0xff]  }
  0xbe   :  { %2031 = vmatpush1.bf16.msra.mxu0 %v5107_v6  ;;  %2203 = vmatpush1.bf16.msra.mxu1 %v5108_v7  ;;  %v5121_v16 = vld [vmem:[#allocation2 + $0xa4] ss:$20 sps:$4 sm:$0xff]   ;;  %v5123_v17 = vld [vmem:[#allocation2 + $0xac] ss:$20 sps:$4 sm:$0xff]   ;;  %v5129_v21 = vld [vmem:[#allocation2 + $0xd4] ss:$20 sps:$4 sm:$0xff]  }
  0xbf   :  { %2032 = vmatprep.subr.bf16.mxu0 %v5109_v8  ;;  %2204 = vmatprep.subr.bf16.mxu1 %v5111_v9  ;;  %v5125_v18 = vld [vmem:[#allocation2 + $0xa0] ss:$20 sps:$4 sm:$0xff]   ;;  %v5131_v22 = vld [vmem:[#allocation2 + $0xc8] ss:$20 sps:$4 sm:$0xff]   ;;  %v5132_v23 = vld [vmem:[#allocation2 + $0xd0] ss:$20 sps:$4 sm:$0xff]  }
  0xc0   :  { %v5127_v20 = vld [vmem:[#allocation2 + $0xcc] ss:$20 sps:$4 sm:$0xff]   ;;  %v5133_v24 = vld [vmem:[#allocation2 + $0xf4] ss:$20 sps:$4 sm:$0xff]   ;;  %v5135_v25 = vld [vmem:[#allocation2 + $0xfc] ss:$20 sps:$4 sm:$0xff]  }
  0xc1   :  { %v5137_v26 = vld [vmem:[#allocation2 + $0xf0] ss:$20 sps:$4 sm:$0xff]   ;;  %v5138_v27 = vld [vmem:[#allocation2 + $0xf8] ss:$20 sps:$4 sm:$0xff]   ;;  %v5144_v31 = vld [vmem:[#allocation2 + $0x120] ss:$20 sps:$4 sm:$0xff]  }
  0xc2   :  { %2033 = vmatpush1.bf16.msra.mxu0 %v5113_v10  ;;  %2205 = vmatpush1.bf16.msra.mxu1 %v5114_v11  ;;  %v5139_v28 = vld [vmem:[#allocation2 + $0x11c] ss:$20 sps:$4 sm:$0xff]   ;;  %v5141_v29 = vld [vmem:[#allocation2 + $0x124] ss:$20 sps:$4 sm:$0xff]   ;;  %v5147_v33 = vld [vmem:[#allocation2 + $0x14c] ss:$20 sps:$4 sm:$0xff]  }
  0xc3   :  { %2034 = vmatprep.subr.bf16.mxu0 %v5115_v12  ;;  %2206 = vmatprep.subr.bf16.mxu1 %v5117_v13  ;;  %v5143_v30 = vld [vmem:[#allocation2 + $0x118] ss:$20 sps:$4 sm:$0xff]   ;;  %v5149_v34 = vld [vmem:[#allocation2 + $0x140] ss:$20 sps:$4 sm:$0xff]   ;;  %v5150_v35 = vld [vmem:[#allocation2 + $0x148] ss:$20 sps:$4 sm:$0xff]  }
  0xc4   :  { %v5145_v32 = vld [vmem:[#allocation2 + $0x144] ss:$20 sps:$4 sm:$0xff]   ;;  %v5151_v36 = vld [vmem:[#allocation2 + $0x16c] ss:$20 sps:$4 sm:$0xff]   ;;  %v5153_v37 = vld [vmem:[#allocation2 + $0x174] ss:$20 sps:$4 sm:$0xff]  }
  0xc5   :  { %v5155_v38 = vld [vmem:[#allocation2 + $0x168] ss:$20 sps:$4 sm:$0xff]   ;;  %v5156_v39 = vld [vmem:[#allocation2 + $0x170] ss:$20 sps:$4 sm:$0xff]   ;;  %v5162_v43 = vld [vmem:[#allocation2 + $0x198] ss:$20 sps:$4 sm:$0xff]  }
  0xc6   :  { %2035 = vmatpush1.bf16.msra.mxu0 %v5119_v14  ;;  %2207 = vmatpush1.bf16.msra.mxu1 %v5120_v15  ;;  %v5157_v40 = vld [vmem:[#allocation2 + $0x194] ss:$20 sps:$4 sm:$0xff]   ;;  %v5159_v41 = vld [vmem:[#allocation2 + $0x19c] ss:$20 sps:$4 sm:$0xff]   ;;  %v5165_v45 = vld [vmem:[#allocation2 + $0x1c4] ss:$20 sps:$4 sm:$0xff]  }
  0xc7   :  { %2036 = vmatprep.subr.bf16.mxu0 %v5121_v16  ;;  %2208 = vmatprep.subr.bf16.mxu1 %v5123_v17  ;;  %v5161_v42 = vld [vmem:[#allocation2 + $0x190] ss:$20 sps:$4 sm:$0xff]   ;;  %v5167_v46 = vld [vmem:[#allocation2 + $0x1b8] ss:$20 sps:$4 sm:$0xff]   ;;  %v5168_v48 = vld [vmem:[#allocation2 + $0x1c0] ss:$20 sps:$4 sm:$0xff]  }
  0xc8   :  { %v5163_v44 = vld [vmem:[#allocation2 + $0x1bc] ss:$20 sps:$4 sm:$0xff]   ;;  %v5193_v47 = vld [vmem:[%s6317_s0 + $0x4] ss:$28 sps:$4 sm:$0xff]   ;;  %v5177_v54 = vld [vmem:[#allocation2 + $0x214] ss:$20 sps:$4 sm:$0xff]  }
  0xc9   :  { %v5169_v49 = vld [vmem:[#allocation2 + $0x1e4] ss:$20 sps:$4 sm:$0xff]   ;;  %v5171_v50 = vld [vmem:[#allocation2 + $0x1ec] ss:$20 sps:$4 sm:$0xff]   ;;  %2060 = vmatprep.mubr.bf16.mxu0 %v5193_v47  ;;  %2232 = vmatprep.mubr.bf16.mxu1 %v5193_v47  ;;  %v5174_v52 = vld [vmem:[#allocation2 + $0x1e8] ss:$20 sps:$4 sm:$0xff]  }
  0xca   :  { %2037 = vmatpush1.bf16.msra.mxu0 %v5125_v18  ;;  %2209 = vmatpush1.bf16.msra.mxu1 %v5126_v19  ;;  %v5173_v51 = vld [vmem:[#allocation2 + $0x1e0] ss:$20 sps:$4 sm:$0xff]   ;;  %v5179_v55 = vld [vmem:[#allocation2 + $0x208] ss:$20 sps:$4 sm:$0xff]   ;;  %v5180_v56 = vld [vmem:[#allocation2 + $0x210] ss:$20 sps:$4 sm:$0xff]  }
  0xcb   :  { %2038 = vmatprep.subr.bf16.mxu0 %v5127_v20  ;;  %2210 = vmatprep.subr.bf16.mxu1 %v5129_v21  ;;  %v5175_v53 = vld [vmem:[#allocation2 + $0x20c] ss:$20 sps:$4 sm:$0xff]   ;;  %v5181_v57 = vld [vmem:[#allocation2 + $0x234] ss:$20 sps:$4 sm:$0xff]   ;;  %v5183_v58 = vld [vmem:[#allocation2 + $0x23c] ss:$20 sps:$4 sm:$0xff]  }
  0xcc   :  { %v5185_v59 = vld [vmem:[#allocation2 + $0x230] ss:$20 sps:$4 sm:$0xff]   ;;  %v5186_v60 = vld [vmem:[#allocation2 + $0x238] ss:$20 sps:$4 sm:$0xff]   ;;  %v5192_v0 = vld [vmem:[#allocation2 + $0x260] ss:$20 sps:$4 sm:$0xff]  }
  0xcd   :  { %v5187_v61 = vld [vmem:[#allocation2 + $0x25c] ss:$20 sps:$4 sm:$0xff]   ;;  %v5189_v62 = vld [vmem:[#allocation2 + $0x264] ss:$20 sps:$4 sm:$0xff]   ;;  %v5200_v2 = vld [vmem:[#allocation2 + $0x28c] ss:$20 sps:$4 sm:$0xff]  }
  0xce   :  { %2039 = vmatpush1.bf16.msra.mxu0 %v5131_v22  ;;  %2211 = vmatpush1.bf16.msra.mxu1 %v5132_v23  ;;  %v5191_v63 = vld [vmem:[#allocation2 + $0x258] ss:$20 sps:$4 sm:$0xff]   ;;  %v5195_v3 = vld [vmem:[#allocation2 + $0x280] ss:$20 sps:$4 sm:$0xff]   ;;  %v5198_v4 = vld [vmem:[#allocation2 + $0x288] ss:$20 sps:$4 sm:$0xff]  }
  0xcf   :  { %2040 = vmatprep.subr.bf16.mxu0 %v5133_v24  ;;  %2212 = vmatprep.subr.bf16.mxu1 %v5135_v25  ;;  %v5197_v1 = vld [vmem:[#allocation2 + $0x284] ss:$20 sps:$4 sm:$0xff]   ;;  %v5201_v5 = vld [vmem:[%s6317_s0] ss:$28 sps:$4 sm:$0xff]   ;;  %v5207_v7 = vld [vmem:[#allocation2 + $0x2b4] ss:$20 sps:$4 sm:$0xff]  }
  0xd0   :  { %v5204_v6 = vld [vmem:[#allocation2 + $0x2ac] ss:$20 sps:$4 sm:$0xff]   ;;  %v5202_v8 = vld [vmem:[#allocation2 + $0x2a8] ss:$20 sps:$4 sm:$0xff]   ;;  %v5205_v9 = vld [vmem:[#allocation2 + $0x2b0] ss:$20 sps:$4 sm:$0xff]  }
  0xd1   :  { %v5210_v10 = vld [vmem:[#allocation2 + $0x2d4] ss:$20 sps:$4 sm:$0xff]   ;;  %v5213_v11 = vld [vmem:[#allocation2 + $0x2dc] ss:$20 sps:$4 sm:$0xff]   ;;  %v5211_v13 = vld [vmem:[#allocation2 + $0x2d8] ss:$20 sps:$4 sm:$0xff]  }
  0xd2   :  { %2041 = vmatpush1.bf16.msra.mxu0 %v5137_v26  ;;  %2213 = vmatpush1.bf16.msra.mxu1 %v5138_v27  ;;  %v5208_v12 = vld [vmem:[#allocation2 + $0x2d0] ss:$20 sps:$4 sm:$0xff]   ;;  %v5214_v16 = vld [vmem:[#allocation2 + $0x2f8] ss:$20 sps:$4 sm:$0xff]   ;;  %v5217_v17 = vld [vmem:[#allocation2 + $0x300] ss:$20 sps:$4 sm:$0xff]  }
  0xd3   :  { %2042 = vmatprep.subr.bf16.mxu0 %v5139_v28  ;;  %2214 = vmatprep.subr.bf16.mxu1 %v5141_v29  ;;  %v5216_v14 = vld [vmem:[#allocation2 + $0x2fc] ss:$20 sps:$4 sm:$0xff]   ;;  %v5219_v15 = vld [vmem:[#allocation2 + $0x304] ss:$20 sps:$4 sm:$0xff]   ;;  %v5225_v19 = vld [vmem:[#allocation2 + $0x32c] ss:$20 sps:$4 sm:$0xff]  }
  0xd4   :  { %v5222_v18 = vld [vmem:[#allocation2 + $0x324] ss:$20 sps:$4 sm:$0xff]   ;;  %v5220_v20 = vld [vmem:[#allocation2 + $0x320] ss:$20 sps:$4 sm:$0xff]   ;;  %v5223_v21 = vld [vmem:[#allocation2 + $0x328] ss:$20 sps:$4 sm:$0xff]  }
  0xd5   :  { %v5228_v22 = vld [vmem:[#allocation2 + $0x34c] ss:$20 sps:$4 sm:$0xff]   ;;  %v5231_v23 = vld [vmem:[#allocation2 + $0x354] ss:$20 sps:$4 sm:$0xff]   ;;  %v5229_v25 = vld [vmem:[#allocation2 + $0x350] ss:$20 sps:$4 sm:$0xff]  }
  0xd6   :  { %2043 = vmatpush1.bf16.msra.mxu0 %v5143_v30  ;;  %2215 = vmatpush1.bf16.msra.mxu1 %v5144_v31  ;;  %v5226_v24 = vld [vmem:[#allocation2 + $0x348] ss:$20 sps:$4 sm:$0xff]   ;;  %v5232_v28 = vld [vmem:[#allocation2 + $0x370] ss:$20 sps:$4 sm:$0xff]   ;;  %v5235_v29 = vld [vmem:[#allocation2 + $0x378] ss:$20 sps:$4 sm:$0xff]  }
  0xd7   :  { %2044 = vmatprep.subr.bf16.mxu0 %v5145_v32  ;;  %2216 = vmatprep.subr.bf16.mxu1 %v5147_v33  ;;  %v5234_v26 = vld [vmem:[#allocation2 + $0x374] ss:$20 sps:$4 sm:$0xff]   ;;  %v5237_v27 = vld [vmem:[#allocation2 + $0x37c] ss:$20 sps:$4 sm:$0xff]   ;;  %v5243_v32 = vld [vmem:[#allocation2 + $0x3a4] ss:$20 sps:$4 sm:$0xff]  }
  0xd8   :  { %v5294_v30 = vld [vmem:[%s6317_s0 + $0xc] ss:$28 sps:$4 sm:$0xff]   ;;  %v5240_v31 = vld [vmem:[#allocation2 + $0x39c] ss:$20 sps:$4 sm:$0xff]   ;;  %vm6012_vm0 = vmmov 0  }
  0xd9   :  { %v5238_v33 = vld [vmem:[#allocation2 + $0x398] ss:$20 sps:$4 sm:$0xff]   ;;  %v5264_v47 = vld [vmem:[#allocation2 + $0x43c] ss:$20 sps:$4 sm:$0xff]  }
  0xda   :  { %2045 = vmatpush1.bf16.msra.mxu0 %v5149_v34  ;;  %2217 = vmatpush1.bf16.msra.mxu1 %v5150_v35  ;;  %v5241_v34 = vld [vmem:[#allocation2 + $0x3a0] ss:$20 sps:$4 sm:$0xff]   ;;  %v5246_v35 = vld [vmem:[#allocation2 + $0x3c4] ss:$20 sps:$4 sm:$0xff]  }
  0xdb   :  { %2046 = vmatprep.subr.bf16.mxu0 %v5151_v36  ;;  %2218 = vmatprep.subr.bf16.mxu1 %v5153_v37  ;;  %v5249_v36 = vld [vmem:[#allocation2 + $0x3cc] ss:$20 sps:$4 sm:$0xff]  }
  0xdc   :  { %v5244_v37 = vld [vmem:[#allocation2 + $0x3c0] ss:$20 sps:$4 sm:$0xff]  }
  0xde   :  { %2047 = vmatpush1.bf16.msra.mxu0 %v5155_v38  ;;  %2219 = vmatpush1.bf16.msra.mxu1 %v5156_v39  ;;  %v5247_v38 = vld [vmem:[#allocation2 + $0x3c8] ss:$20 sps:$4 sm:$0xff]   ;;  %v5252_v39 = vld [vmem:[#allocation2 + $0x3ec] ss:$20 sps:$4 sm:$0xff]  }
  0xdf   :  { %2048 = vmatprep.subr.bf16.mxu0 %v5157_v40  ;;  %2220 = vmatprep.subr.bf16.mxu1 %v5159_v41  ;;  %v5255_v40 = vld [vmem:[#allocation2 + $0x3f4] ss:$20 sps:$4 sm:$0xff]  }
  0xe0   :  { %v5250_v41 = vld [vmem:[#allocation2 + $0x3e8] ss:$20 sps:$4 sm:$0xff]  }
  0xe2   :  { %2049 = vmatpush1.bf16.msra.mxu0 %v5161_v42  ;;  %2221 = vmatpush1.bf16.msra.mxu1 %v5162_v43  ;;  %v5253_v42 = vld [vmem:[#allocation2 + $0x3f0] ss:$20 sps:$4 sm:$0xff]   ;;  %v5258_v43 = vld [vmem:[#allocation2 + $0x414] ss:$20 sps:$4 sm:$0xff]  }
  0xe3   :  { %2050 = vmatprep.subr.bf16.mxu0 %v5163_v44  ;;  %2222 = vmatprep.subr.bf16.mxu1 %v5165_v45  ;;  %v5261_v44 = vld [vmem:[#allocation2 + $0x41c] ss:$20 sps:$4 sm:$0xff]  }
  0xe4   :  { %v5256_v45 = vld [vmem:[#allocation2 + $0x410] ss:$20 sps:$4 sm:$0xff]  }
  0xe6   :  { %2051 = vmatpush1.bf16.msra.mxu0 %v5167_v46  ;;  %2223 = vmatpush1.bf16.msra.mxu1 %v5168_v48  ;;  %v5259_v46 = vld [vmem:[#allocation2 + $0x418] ss:$20 sps:$4 sm:$0xff]  }
  0xe7   :  { %2052 = vmatprep.subr.bf16.mxu0 %v5169_v49  ;;  %2224 = vmatprep.subr.bf16.mxu1 %v5171_v50  ;;  %v5267_v48 = vld [vmem:[#allocation2 + $0x444] ss:$20 sps:$4 sm:$0xff]   ;;  %v5265_v50 = vld [vmem:[#allocation2 + $0x440] ss:$20 sps:$4 sm:$0xff]  }
  0xe8   :  { %v5262_v49 = vld [vmem:[#allocation2 + $0x438] ss:$20 sps:$4 sm:$0xff]  }
  0xea   :  { %2053 = vmatpush1.bf16.msra.mxu0 %v5173_v51  ;;  %2225 = vmatpush1.bf16.msra.mxu1 %v5174_v52  ;;  %v5270_v51 = vld [vmem:[#allocation2 + $0x464] ss:$20 sps:$4 sm:$0xff]   ;;  %v5273_v52 = vld [vmem:[#allocation2 + $0x46c] ss:$20 sps:$4 sm:$0xff]  }
  0xeb   :  { %2054 = vmatprep.subr.bf16.mxu0 %v5175_v53  ;;  %2226 = vmatprep.subr.bf16.mxu1 %v5177_v54  ;;  %v5268_v53 = vld [vmem:[#allocation2 + $0x460] ss:$20 sps:$4 sm:$0xff]   ;;  %v5271_v54 = vld [vmem:[#allocation2 + $0x468] ss:$20 sps:$4 sm:$0xff]  }
  0xee   :  { %2055 = vmatpush1.bf16.msra.mxu0 %v5179_v55  ;;  %2227 = vmatpush1.bf16.msra.mxu1 %v5180_v56  ;;  %v5276_v55 = vld [vmem:[#allocation2 + $0x48c] ss:$20 sps:$4 sm:$0xff]   ;;  %v5279_v56 = vld [vmem:[#allocation2 + $0x494] ss:$20 sps:$4 sm:$0xff]  }
  0xef   :  { %2056 = vmatprep.subr.bf16.mxu0 %v5181_v57  ;;  %2228 = vmatprep.subr.bf16.mxu1 %v5183_v58  ;;  %v5274_v57 = vld [vmem:[#allocation2 + $0x488] ss:$20 sps:$4 sm:$0xff]   ;;  %v5277_v58 = vld [vmem:[#allocation2 + $0x490] ss:$20 sps:$4 sm:$0xff]  }
  0xf2   :  { %2057 = vmatpush1.bf16.msra.mxu0 %v5185_v59  ;;  %2229 = vmatpush1.bf16.msra.mxu1 %v5186_v60  ;;  %v5282_v59 = vld [vmem:[#allocation2 + $0x4b4] ss:$20 sps:$4 sm:$0xff]   ;;  %v5285_v60 = vld [vmem:[#allocation2 + $0x4bc] ss:$20 sps:$4 sm:$0xff]  }
  0xf3   :  { %2058 = vmatprep.subr.bf16.mxu0 %v5187_v61  ;;  %2230 = vmatprep.subr.bf16.mxu1 %v5189_v62  ;;  %v5280_v61 = vld [vmem:[#allocation2 + $0x4b0] ss:$20 sps:$4 sm:$0xff]   ;;  %v5283_v62 = vld [vmem:[#allocation2 + $0x4b8] ss:$20 sps:$4 sm:$0xff]  }
  0xf6   :  { %2059 = vmatpush1.bf16.msra.mxu0 %v5191_v63  ;;  %2231 = vmatpush1.bf16.msra.mxu1 %v5192_v0  ;;  %v5288_v63 = vld [vmem:[#allocation2 + $0x4dc] ss:$20 sps:$4 sm:$0xff]   ;;  %v5291_v0 = vld [vmem:[#allocation2 + $0x4e4] ss:$20 sps:$4 sm:$0xff]  }
  0xf7   :  { %2071 = vmatprep.subr.bf16.mxu0 %v5197_v1  ;;  %2243 = vmatprep.subr.bf16.mxu1 %v5200_v2  ;;  %v5286_v1 = vld [vmem:[#allocation2 + $0x4d8] ss:$20 sps:$4 sm:$0xff]   ;;  %v5289_v2 = vld [vmem:[#allocation2 + $0x4e0] ss:$20 sps:$4 sm:$0xff]  }
  0xf9   :  { %2061 = vmatmul.mubr.bf16.vlgmr.msra.gmra.mrb[0].mxu0 %v5201_v5  ;;  %2233 = vmatmul.mubr.bf16.vlgmr.msra.gmra.mrb[0].mxu1 %v5201_v5  ;;  %v5292_v5 = vld [vmem:[%s6317_s0 + $0x8] ss:$28 sps:$4 sm:$0xff]  }
  0xfa   :  { %2072 = vmatpush1.bf16.msra.mxu0 %v5195_v3  ;;  %2244 = vmatpush1.bf16.msra.mxu1 %v5198_v4  ;;  %v5297_v3 = vld [vmem:[#allocation2 + $0x504] ss:$20 sps:$4 sm:$0xff]   ;;  %v5300_v4 = vld [vmem:[#allocation2 + $0x50c] ss:$20 sps:$4 sm:$0xff]  }
  0xfb   :  { %2073 = vmatprep.subr.bf16.mxu0 %v5204_v6  ;;  %2245 = vmatprep.subr.bf16.mxu1 %v5207_v7  ;;  %v5295_v6 = vld [vmem:[#allocation2 + $0x500] ss:$20 sps:$4 sm:$0xff]   ;;  %v5298_v7 = vld [vmem:[#allocation2 + $0x508] ss:$20 sps:$4 sm:$0xff]  }
  0xfc   :  { %2103 = vmatprep.mubr.bf16.mxu0 %v5294_v30  ;;  %2275 = vmatprep.mubr.bf16.mxu1 %v5294_v30  ;;  %v5336_v30 = vld [vmem:[#allocation2 + $0x5fc] ss:$20 sps:$4 sm:$0xff]  }
  0xfe   :  { %2074 = vmatpush1.bf16.msra.mxu0 %v5202_v8  ;;  %2246 = vmatpush1.bf16.msra.mxu1 %v5205_v9  ;;  %v5303_v8 = vld [vmem:[#allocation2 + $0x52c] ss:$20 sps:$4 sm:$0xff]   ;;  %v5306_v9 = vld [vmem:[#allocation2 + $0x534] ss:$20 sps:$4 sm:$0xff]  }
  0xff   :  { %2075 = vmatprep.subr.bf16.mxu0 %v5210_v10  ;;  %2247 = vmatprep.subr.bf16.mxu1 %v5213_v11  ;;  %v5301_v10 = vld [vmem:[#allocation2 + $0x528] ss:$20 sps:$4 sm:$0xff]   ;;  %v5304_v11 = vld [vmem:[#allocation2 + $0x530] ss:$20 sps:$4 sm:$0xff]  }
 0x102   :  { %2076 = vmatpush1.bf16.msra.mxu0 %v5208_v12  ;;  %2248 = vmatpush1.bf16.msra.mxu1 %v5211_v13  ;;  %v5393_v12 = vld [vmem:[%s6317_s0 + $0x14] ss:$28 sps:$4 sm:$0xff]  }
 0x103   :  { %2077 = vmatprep.subr.bf16.mxu0 %v5216_v14  ;;  %2249 = vmatprep.subr.bf16.mxu1 %v5219_v15  ;;  %v5309_v13 = vld [vmem:[#allocation2 + $0x554] ss:$20 sps:$4 sm:$0xff]   ;;  %v5312_v14 = vld [vmem:[#allocation2 + $0x55c] ss:$20 sps:$4 sm:$0xff]  }
 0x104   :  { %v5307_v15 = vld [vmem:[#allocation2 + $0x550] ss:$20 sps:$4 sm:$0xff]  }
 0x106   :  { %2078 = vmatpush1.bf16.msra.mxu0 %v5214_v16  ;;  %2250 = vmatpush1.bf16.msra.mxu1 %v5217_v17  ;;  %v5310_v16 = vld [vmem:[#allocation2 + $0x558] ss:$20 sps:$4 sm:$0xff]   ;;  %v5315_v17 = vld [vmem:[#allocation2 + $0x57c] ss:$20 sps:$4 sm:$0xff]  }
 0x107   :  { %2079 = vmatprep.subr.bf16.mxu0 %v5222_v18  ;;  %2251 = vmatprep.subr.bf16.mxu1 %v5225_v19  ;;  %v5318_v18 = vld [vmem:[#allocation2 + $0x584] ss:$20 sps:$4 sm:$0xff]  }
 0x108   :  { %v5313_v19 = vld [vmem:[#allocation2 + $0x578] ss:$20 sps:$4 sm:$0xff]  }
 0x10a   :  { %2080 = vmatpush1.bf16.msra.mxu0 %v5220_v20  ;;  %2252 = vmatpush1.bf16.msra.mxu1 %v5223_v21  ;;  %v5316_v20 = vld [vmem:[#allocation2 + $0x580] ss:$20 sps:$4 sm:$0xff]   ;;  %v5321_v21 = vld [vmem:[#allocation2 + $0x5a4] ss:$20 sps:$4 sm:$0xff]  }
 0x10b   :  { %2081 = vmatprep.subr.bf16.mxu0 %v5228_v22  ;;  %2253 = vmatprep.subr.bf16.mxu1 %v5231_v23  ;;  %v5324_v22 = vld [vmem:[#allocation2 + $0x5ac] ss:$20 sps:$4 sm:$0xff]  }
 0x10c   :  { %v5319_v23 = vld [vmem:[#allocation2 + $0x5a0] ss:$20 sps:$4 sm:$0xff]  }
 0x10e   :  { %2082 = vmatpush1.bf16.msra.mxu0 %v5226_v24  ;;  %2254 = vmatpush1.bf16.msra.mxu1 %v5229_v25  ;;  %v5322_v24 = vld [vmem:[#allocation2 + $0x5a8] ss:$20 sps:$4 sm:$0xff]   ;;  %v5327_v25 = vld [vmem:[#allocation2 + $0x5cc] ss:$20 sps:$4 sm:$0xff]  }
 0x10f   :  { %2083 = vmatprep.subr.bf16.mxu0 %v5234_v26  ;;  %2255 = vmatprep.subr.bf16.mxu1 %v5237_v27  ;;  %v5330_v26 = vld [vmem:[#allocation2 + $0x5d4] ss:$20 sps:$4 sm:$0xff]  }
 0x110   :  { %v5325_v27 = vld [vmem:[#allocation2 + $0x5c8] ss:$20 sps:$4 sm:$0xff]  }
 0x112   :  { %2084 = vmatpush1.bf16.msra.mxu0 %v5232_v28  ;;  %2256 = vmatpush1.bf16.msra.mxu1 %v5235_v29  ;;  %v5328_v28 = vld [vmem:[#allocation2 + $0x5d0] ss:$20 sps:$4 sm:$0xff]   ;;  %v5333_v29 = vld [vmem:[#allocation2 + $0x5f4] ss:$20 sps:$4 sm:$0xff]  }
 0x113   :  { %2085 = vmatprep.subr.bf16.mxu0 %v5240_v31  ;;  %2257 = vmatprep.subr.bf16.mxu1 %v5243_v32  ;;  %v5331_v31 = vld [vmem:[#allocation2 + $0x5f0] ss:$20 sps:$4 sm:$0xff]   ;;  %v5334_v32 = vld [vmem:[#allocation2 + $0x5f8] ss:$20 sps:$4 sm:$0xff]  }
 0x116   :  { %2086 = vmatpush1.bf16.msra.mxu0 %v5238_v33  ;;  %2258 = vmatpush1.bf16.msra.mxu1 %v5241_v34  ;;  %v5339_v33 = vld [vmem:[#allocation2 + $0x61c] ss:$20 sps:$4 sm:$0xff]   ;;  %v5342_v34 = vld [vmem:[#allocation2 + $0x624] ss:$20 sps:$4 sm:$0xff]  }
 0x117   :  { %2087 = vmatprep.subr.bf16.mxu0 %v5246_v35  ;;  %2259 = vmatprep.subr.bf16.mxu1 %v5249_v36  ;;  %v5337_v35 = vld [vmem:[#allocation2 + $0x618] ss:$20 sps:$4 sm:$0xff]   ;;  %v5340_v36 = vld [vmem:[#allocation2 + $0x620] ss:$20 sps:$4 sm:$0xff]  }
 0x11a   :  { %2088 = vmatpush1.bf16.msra.mxu0 %v5244_v37  ;;  %2260 = vmatpush1.bf16.msra.mxu1 %v5247_v38  ;;  %v5345_v37 = vld [vmem:[#allocation2 + $0x644] ss:$20 sps:$4 sm:$0xff]   ;;  %v5348_v38 = vld [vmem:[#allocation2 + $0x64c] ss:$20 sps:$4 sm:$0xff]  }
 0x11b   :  { %2089 = vmatprep.subr.bf16.mxu0 %v5252_v39  ;;  %2261 = vmatprep.subr.bf16.mxu1 %v5255_v40  ;;  %v5343_v39 = vld [vmem:[#allocation2 + $0x640] ss:$20 sps:$4 sm:$0xff]   ;;  %v5346_v40 = vld [vmem:[#allocation2 + $0x648] ss:$20 sps:$4 sm:$0xff]  }
 0x11e   :  { %2090 = vmatpush1.bf16.msra.mxu0 %v5250_v41  ;;  %2262 = vmatpush1.bf16.msra.mxu1 %v5253_v42  ;;  %v5351_v41 = vld [vmem:[#allocation2 + $0x66c] ss:$20 sps:$4 sm:$0xff]   ;;  %v5354_v42 = vld [vmem:[#allocation2 + $0x674] ss:$20 sps:$4 sm:$0xff]  }
 0x11f   :  { %2091 = vmatprep.subr.bf16.mxu0 %v5258_v43  ;;  %2263 = vmatprep.subr.bf16.mxu1 %v5261_v44  ;;  %v5349_v43 = vld [vmem:[#allocation2 + $0x668] ss:$20 sps:$4 sm:$0xff]   ;;  %v5352_v44 = vld [vmem:[#allocation2 + $0x670] ss:$20 sps:$4 sm:$0xff]  }
 0x122   :  { %2092 = vmatpush1.bf16.msra.mxu0 %v5256_v45  ;;  %2264 = vmatpush1.bf16.msra.mxu1 %v5259_v46  ;;  %v5357_v45 = vld [vmem:[#allocation2 + $0x694] ss:$20 sps:$4 sm:$0xff]   ;;  %v5360_v46 = vld [vmem:[#allocation2 + $0x69c] ss:$20 sps:$4 sm:$0xff]  }
 0x123   :  { %2093 = vmatprep.subr.bf16.mxu0 %v5264_v47  ;;  %2265 = vmatprep.subr.bf16.mxu1 %v5267_v48  ;;  %v5355_v47 = vld [vmem:[#allocation2 + $0x690] ss:$20 sps:$4 sm:$0xff]   ;;  %v5358_v48 = vld [vmem:[#allocation2 + $0x698] ss:$20 sps:$4 sm:$0xff]  }
 0x126   :  { %2094 = vmatpush1.bf16.msra.mxu0 %v5262_v49  ;;  %2266 = vmatpush1.bf16.msra.mxu1 %v5265_v50  ;;  %v5363_v49 = vld [vmem:[#allocation2 + $0x6bc] ss:$20 sps:$4 sm:$0xff]   ;;  %v5366_v50 = vld [vmem:[#allocation2 + $0x6c4] ss:$20 sps:$4 sm:$0xff]  }
 0x127   :  { %2095 = vmatprep.subr.bf16.mxu0 %v5270_v51  ;;  %2267 = vmatprep.subr.bf16.mxu1 %v5273_v52  ;;  %v5361_v51 = vld [vmem:[#allocation2 + $0x6b8] ss:$20 sps:$4 sm:$0xff]   ;;  %v5364_v52 = vld [vmem:[#allocation2 + $0x6c0] ss:$20 sps:$4 sm:$0xff]  }
 0x12a   :  { %2096 = vmatpush1.bf16.msra.mxu0 %v5268_v53  ;;  %2268 = vmatpush1.bf16.msra.mxu1 %v5271_v54  ;;  %v5369_v53 = vld [vmem:[#allocation2 + $0x6e4] ss:$20 sps:$4 sm:$0xff]   ;;  %v5372_v54 = vld [vmem:[#allocation2 + $0x6ec] ss:$20 sps:$4 sm:$0xff]  }
 0x12b   :  { %2097 = vmatprep.subr.bf16.mxu0 %v5276_v55  ;;  %2269 = vmatprep.subr.bf16.mxu1 %v5279_v56  ;;  %v5367_v55 = vld [vmem:[#allocation2 + $0x6e0] ss:$20 sps:$4 sm:$0xff]   ;;  %v5370_v56 = vld [vmem:[#allocation2 + $0x6e8] ss:$20 sps:$4 sm:$0xff]  }
 0x12e   :  { %2098 = vmatpush1.bf16.msra.mxu0 %v5274_v57  ;;  %2270 = vmatpush1.bf16.msra.mxu1 %v5277_v58  ;;  %v5375_v57 = vld [vmem:[#allocation2 + $0x70c] ss:$20 sps:$4 sm:$0xff]   ;;  %v5378_v58 = vld [vmem:[#allocation2 + $0x714] ss:$20 sps:$4 sm:$0xff]  }
 0x12f   :  { %2099 = vmatprep.subr.bf16.mxu0 %v5282_v59  ;;  %2271 = vmatprep.subr.bf16.mxu1 %v5285_v60  ;;  %v5373_v59 = vld [vmem:[#allocation2 + $0x708] ss:$20 sps:$4 sm:$0xff]   ;;  %v5376_v60 = vld [vmem:[#allocation2 + $0x710] ss:$20 sps:$4 sm:$0xff]  }
 0x132   :  { %2100 = vmatpush1.bf16.msra.mxu0 %v5280_v61  ;;  %2272 = vmatpush1.bf16.msra.mxu1 %v5283_v62  ;;  %v5381_v61 = vld [vmem:[#allocation2 + $0x734] ss:$20 sps:$4 sm:$0xff]   ;;  %v5384_v62 = vld [vmem:[#allocation2 + $0x73c] ss:$20 sps:$4 sm:$0xff]  }
 0x133   :  { %2101 = vmatprep.subr.bf16.mxu0 %v5288_v63  ;;  %2273 = vmatprep.subr.bf16.mxu1 %v5291_v0  ;;  %v5379_v63 = vld [vmem:[#allocation2 + $0x730] ss:$20 sps:$4 sm:$0xff]   ;;  %v5382_v0 = vld [vmem:[#allocation2 + $0x738] ss:$20 sps:$4 sm:$0xff]  }
 0x136   :  { %2102 = vmatpush1.bf16.msra.mxu0 %v5286_v1  ;;  %2274 = vmatpush1.bf16.msra.mxu1 %v5289_v2  ;;  %v5387_v1 = vld [vmem:[#allocation2 + $0x75c] ss:$20 sps:$4 sm:$0xff]   ;;  %v5390_v2 = vld [vmem:[#allocation2 + $0x764] ss:$20 sps:$4 sm:$0xff]  }
 0x137   :  { %2114 = vmatprep.subr.bf16.mxu0 %v5297_v3  ;;  %2286 = vmatprep.subr.bf16.mxu1 %v5300_v4  ;;  %v5385_v3 = vld [vmem:[#allocation2 + $0x758] ss:$20 sps:$4 sm:$0xff]   ;;  %v5388_v4 = vld [vmem:[#allocation2 + $0x760] ss:$20 sps:$4 sm:$0xff]  }
 0x139   :  { %2104 = vmatmul.mubr.bf16.vlgmr.msra.gmra.mrb[0].mxu0 %v5292_v5  ;;  %2276 = vmatmul.mubr.bf16.vlgmr.msra.gmra.mrb[0].mxu1 %v5292_v5  ;;  %v5396_v5 = vld [vmem:[#allocation2 + $0x784] ss:$20 sps:$4 sm:$0xff]  }
 0x13a   :  { %2115 = vmatpush1.bf16.msra.mxu0 %v5295_v6  ;;  %2287 = vmatpush1.bf16.msra.mxu1 %v5298_v7  ;;  %v6211_v6 = vld [vmem:[%s6317_s0 + $0x10] ss:$28 sps:$4 sm:$0xff]  }
 0x13b   :  { %2116 = vmatprep.subr.bf16.mxu0 %v5303_v8  ;;  %2288 = vmatprep.subr.bf16.mxu1 %v5306_v9  ;;  %v5399_v7 = vld [vmem:[#allocation2 + $0x78c] ss:$20 sps:$4 sm:$0xff]   ;;  %v5397_v9 = vld [vmem:[#allocation2 + $0x788] ss:$20 sps:$4 sm:$0xff]  }
 0x13c   :  { %2146 = vmatprep.mubr.bf16.mxu0 %v5393_v12  ;;  %2318 = vmatprep.mubr.bf16.mxu1 %v5393_v12  ;;  %v5394_v8 = vld [vmem:[#allocation2 + $0x780] ss:$20 sps:$4 sm:$0xff]   ;;  %v5400_v12 = vld [vmem:[#allocation2 + $0x7a8] ss:$20 sps:$4 sm:$0xff]  }
 0x13e   :  { %2117 = vmatpush1.bf16.msra.mxu0 %v5301_v10  ;;  %2289 = vmatpush1.bf16.msra.mxu1 %v5304_v11  ;;  %v5402_v10 = vld [vmem:[#allocation2 + $0x7ac] ss:$20 sps:$4 sm:$0xff]   ;;  %v5405_v11 = vld [vmem:[#allocation2 + $0x7b4] ss:$20 sps:$4 sm:$0xff]  }
 0x13f   :  { %2118 = vmatprep.subr.bf16.mxu0 %v5309_v13  ;;  %2290 = vmatprep.subr.bf16.mxu1 %v5312_v14  ;;  %v5403_v13 = vld [vmem:[#allocation2 + $0x7b0] ss:$20 sps:$4 sm:$0xff]   ;;  %v5408_v14 = vld [vmem:[#allocation2 + $0x7d4] ss:$20 sps:$4 sm:$0xff]  }
 0x142   :  { %2119 = vmatpush1.bf16.msra.mxu0 %v5307_v15  ;;  %2291 = vmatpush1.bf16.msra.mxu1 %v5310_v16  ;;  %v5411_v15 = vld [vmem:[#allocation2 + $0x7dc] ss:$20 sps:$4 sm:$0xff]  }
 0x143   :  { %2120 = vmatprep.subr.bf16.mxu0 %v5315_v17  ;;  %2292 = vmatprep.subr.bf16.mxu1 %v5318_v18  ;;  %v5406_v16 = vld [vmem:[#allocation2 + $0x7d0] ss:$20 sps:$4 sm:$0xff]   ;;  %v6010_v17 = vmov 0   ;;  %v5409_v18 = vld [vmem:[#allocation2 + $0x7d8] ss:$20 sps:$4 sm:$0xff]  }
 0x146   :  { %2121 = vmatpush1.bf16.msra.mxu0 %v5313_v19  ;;  %2293 = vmatpush1.bf16.msra.mxu1 %v5316_v20  ;;  %v5414_v19 = vld [vmem:[#allocation2 + $0x7fc] ss:$20 sps:$4 sm:$0xff]   ;;  %v5417_v20 = vld [vmem:[#allocation2 + $0x804] ss:$20 sps:$4 sm:$0xff]  }
 0x147   :  { %2122 = vmatprep.subr.bf16.mxu0 %v5321_v21  ;;  %2294 = vmatprep.subr.bf16.mxu1 %v5324_v22  ;;  %v5412_v21 = vld [vmem:[#allocation2 + $0x7f8] ss:$20 sps:$4 sm:$0xff]   ;;  %v5415_v22 = vld [vmem:[#allocation2 + $0x800] ss:$20 sps:$4 sm:$0xff]  }
 0x14a   :  { %2123 = vmatpush1.bf16.msra.mxu0 %v5319_v23  ;;  %2295 = vmatpush1.bf16.msra.mxu1 %v5322_v24  ;;  %v5420_v23 = vld [vmem:[#allocation2 + $0x824] ss:$20 sps:$4 sm:$0xff]   ;;  %v5423_v24 = vld [vmem:[#allocation2 + $0x82c] ss:$20 sps:$4 sm:$0xff]  }
 0x14b   :  { %2124 = vmatprep.subr.bf16.mxu0 %v5327_v25  ;;  %2296 = vmatprep.subr.bf16.mxu1 %v5330_v26  ;;  %v5418_v25 = vld [vmem:[#allocation2 + $0x820] ss:$20 sps:$4 sm:$0xff]   ;;  %v5421_v26 = vld [vmem:[#allocation2 + $0x828] ss:$20 sps:$4 sm:$0xff]  }
 0x14e   :  { %2125 = vmatpush1.bf16.msra.mxu0 %v5325_v27  ;;  %2297 = vmatpush1.bf16.msra.mxu1 %v5328_v28  ;;  %v5426_v27 = vld [vmem:[#allocation2 + $0x84c] ss:$20 sps:$4 sm:$0xff]   ;;  %v5429_v28 = vld [vmem:[#allocation2 + $0x854] ss:$20 sps:$4 sm:$0xff]  }
 0x14f   :  { %2126 = vmatprep.subr.bf16.mxu0 %v5333_v29  ;;  %2298 = vmatprep.subr.bf16.mxu1 %v5336_v30  ;;  %v5424_v29 = vld [vmem:[#allocation2 + $0x848] ss:$20 sps:$4 sm:$0xff]   ;;  %v5427_v30 = vld [vmem:[#allocation2 + $0x850] ss:$20 sps:$4 sm:$0xff]  }
 0x152   :  { %2127 = vmatpush1.bf16.msra.mxu0 %v5331_v31  ;;  %2299 = vmatpush1.bf16.msra.mxu1 %v5334_v32  ;;  %v5432_v31 = vld [vmem:[#allocation2 + $0x874] ss:$20 sps:$4 sm:$0xff]   ;;  %v5435_v32 = vld [vmem:[#allocation2 + $0x87c] ss:$20 sps:$4 sm:$0xff]  }
 0x153   :  { %2128 = vmatprep.subr.bf16.mxu0 %v5339_v33  ;;  %2300 = vmatprep.subr.bf16.mxu1 %v5342_v34  ;;  %v5430_v33 = vld [vmem:[#allocation2 + $0x870] ss:$20 sps:$4 sm:$0xff]   ;;  %v5433_v34 = vld [vmem:[#allocation2 + $0x878] ss:$20 sps:$4 sm:$0xff]  }
 0x156   :  { %2129 = vmatpush1.bf16.msra.mxu0 %v5337_v35  ;;  %2301 = vmatpush1.bf16.msra.mxu1 %v5340_v36  ;;  %v5438_v35 = vld [vmem:[#allocation2 + $0x89c] ss:$20 sps:$4 sm:$0xff]   ;;  %v5441_v36 = vld [vmem:[#allocation2 + $0x8a4] ss:$20 sps:$4 sm:$0xff]  }
 0x157   :  { %2130 = vmatprep.subr.bf16.mxu0 %v5345_v37  ;;  %2302 = vmatprep.subr.bf16.mxu1 %v5348_v38  ;;  %v5436_v37 = vld [vmem:[#allocation2 + $0x898] ss:$20 sps:$4 sm:$0xff]   ;;  %v5439_v38 = vld [vmem:[#allocation2 + $0x8a0] ss:$20 sps:$4 sm:$0xff]  }
 0x15a   :  { %2131 = vmatpush1.bf16.msra.mxu0 %v5343_v39  ;;  %2303 = vmatpush1.bf16.msra.mxu1 %v5346_v40  ;;  %v5443_v39 = vld [vmem:[#allocation2 + $0x150] ss:$20 sps:$4 sm:$0xff]  }
 0x15b   :  { %2132 = vmatprep.subr.bf16.mxu0 %v5351_v41  ;;  %2304 = vmatprep.subr.bf16.mxu1 %v5354_v42  ;;  %v5447_v40 = vld [vmem:[#allocation2 + $0x3d0] ss:$20 sps:$4 sm:$0xff]   ;;  %v6220_v41 = vld [vmem:[%s6317_s0 + $0x18] ss:$28 sps:$4 sm:$0xff]  }
 0x15c   :  { %v5444_v42 = vld [vmem:[#allocation2 + $0x10] ss:$20 sps:$4 sm:$0xff]  }
 0x15e   :  { %2133 = vmatpush1.bf16.msra.mxu0 %v5349_v43  ;;  %2305 = vmatpush1.bf16.msra.mxu1 %v5352_v44  ;;  %v5448_v43 = vld [vmem:[#allocation2 + $0x290] ss:$20 sps:$4 sm:$0xff]   ;;  %v5445_v44 = vld [vmem:[#allocation2 + $0x178] ss:$20 sps:$4 sm:$0xff]  }
 0x15f   :  { %2134 = vmatprep.subr.bf16.mxu0 %v5357_v45  ;;  %2306 = vmatprep.subr.bf16.mxu1 %v5360_v46  ;;  %v5451_v45 = vld [vmem:[#allocation2 + $0x3f8] ss:$20 sps:$4 sm:$0xff]  }
 0x160   :  { %v5446_v46 = vld [vmem:[#allocation2 + $0x38] ss:$20 sps:$4 sm:$0xff]  }
 0x162   :  { %2135 = vmatpush1.bf16.msra.mxu0 %v5355_v47  ;;  %2307 = vmatpush1.bf16.msra.mxu1 %v5358_v48  ;;  %v5449_v47 = vld [vmem:[#allocation2 + $0x1a0] ss:$20 sps:$4 sm:$0xff]   ;;  %v5452_v48 = vld [vmem:[#allocation2 + $0x2b8] ss:$20 sps:$4 sm:$0xff]  }
 0x163   :  { %2136 = vmatprep.subr.bf16.mxu0 %v5363_v49  ;;  %2308 = vmatprep.subr.bf16.mxu1 %v5366_v50  ;;  %v5455_v49 = vld [vmem:[#allocation2 + $0x420] ss:$20 sps:$4 sm:$0xff]  }
 0x164   :  { %v5450_v50 = vld [vmem:[#allocation2 + $0x60] ss:$20 sps:$4 sm:$0xff]  }
 0x166   :  { %2137 = vmatpush1.bf16.msra.mxu0 %v5361_v51  ;;  %2309 = vmatpush1.bf16.msra.mxu1 %v5364_v52  ;;  %v5755_v51 = vld [vmem:[%s6317_s0 + $0x4] ss:$28 sps:$4 sm:$0xff]   ;;  %v5756_v52 = vld [vmem:[%s6317_s0 + $0xc] ss:$28 sps:$4 sm:$0xff]  }
 0x167   :  { %2138 = vmatprep.subr.bf16.mxu0 %v5369_v53  ;;  %2310 = vmatprep.subr.bf16.mxu1 %v5372_v54  ;;  %v5453_v53 = vld [vmem:[#allocation2 + $0x1c8] ss:$20 sps:$4 sm:$0xff]   ;;  %v5456_v54 = vld [vmem:[#allocation2 + $0x2e0] ss:$20 sps:$4 sm:$0xff]  }
 0x16a   :  { %2139 = vmatpush1.bf16.msra.mxu0 %v5367_v55  ;;  %2311 = vmatpush1.bf16.msra.mxu1 %v5370_v56  ;;  %v5459_v55 = vld [vmem:[#allocation2 + $0x448] ss:$20 sps:$4 sm:$0xff]  }
 0x16b   :  { %2140 = vmatprep.subr.bf16.mxu0 %v5375_v57  ;;  %2312 = vmatprep.subr.bf16.mxu1 %v5378_v58  ;;  %v5454_v56 = vld [vmem:[#allocation2 + $0x88] ss:$20 sps:$4 sm:$0xff]   ;;  %v5457_v57 = vld [vmem:[#allocation2 + $0x1f0] ss:$20 sps:$4 sm:$0xff]  }
 0x16c   :  { %v5460_v58 = vld [vmem:[#allocation2 + $0x308] ss:$20 sps:$4 sm:$0xff]  }
 0x16e   :  { %2141 = vmatpush1.bf16.msra.mxu0 %v5373_v59  ;;  %2313 = vmatpush1.bf16.msra.mxu1 %v5376_v60  ;;  %v5463_v59 = vld [vmem:[#allocation2 + $0x470] ss:$20 sps:$4 sm:$0xff]  }
 0x16f   :  { %2142 = vmatprep.subr.bf16.mxu0 %v5381_v61  ;;  %2314 = vmatprep.subr.bf16.mxu1 %v5384_v62  ;;  %v5458_v60 = vld [vmem:[#allocation2 + $0xb0] ss:$20 sps:$4 sm:$0xff]   ;;  %v5461_v61 = vld [vmem:[#allocation2 + $0x218] ss:$20 sps:$4 sm:$0xff]  }
 0x170   :  { %v5464_v62 = vld [vmem:[#allocation2 + $0x330] ss:$20 sps:$4 sm:$0xff]  }
 0x172   :  { %2143 = vmatpush1.bf16.msra.mxu0 %v5379_v63  ;;  %2315 = vmatpush1.bf16.msra.mxu1 %v5382_v0  ;;  %v5467_v63 = vld [vmem:[#allocation2 + $0x498] ss:$20 sps:$4 sm:$0xff]  }
 0x173   :  { %2144 = vmatprep.subr.bf16.mxu0 %v5387_v1  ;;  %2316 = vmatprep.subr.bf16.mxu1 %v5390_v2  ;;  %v5462_v0 = vld [vmem:[#allocation2 + $0xd8] ss:$20 sps:$4 sm:$0xff]   ;;  %v5465_v2 = vld [vmem:[#allocation2 + $0x240] ss:$20 sps:$4 sm:$0xff]  }
 0x174   :  { %v5468_v1 = vld [vmem:[#allocation2 + $0x358] ss:$20 sps:$4 sm:$0xff]  }
 0x176   :  { %2145 = vmatpush1.bf16.msra.mxu0 %v5385_v3  ;;  %2317 = vmatpush1.bf16.msra.mxu1 %v5388_v4  ;;  %v5471_v3 = vld [vmem:[#allocation2 + $0x4c0] ss:$20 sps:$4 sm:$0xff]  }
 0x177   :  { %2157 = vmatprep.subr.bf16.mxu0 %v5396_v5  ;;  %2329 = vmatprep.subr.bf16.mxu1 %v5399_v7  ;;  %v5466_v4 = vld [vmem:[#allocation2 + $0x100] ss:$20 sps:$4 sm:$0xff]   ;;  %v5469_v7 = vld [vmem:[#allocation2 + $0x268] ss:$20 sps:$4 sm:$0xff]  }
 0x178   :  { %v5472_v5 = vld [vmem:[#allocation2 + $0x380] ss:$20 sps:$4 sm:$0xff]  }
 0x179   :  { %2147 = vmatmul.mubr.bf16.vlgmr.msra.gmra.mrb[0].mxu0 %v6211_v6  ;;  %2319 = vmatmul.mubr.bf16.vlgmr.msra.gmra.mrb[0].mxu1 %v6211_v6 }
 0x17a   :  { %2158 = vmatpush1.bf16.msra.mxu0 %v5394_v8  ;;  %2330 = vmatpush1.bf16.msra.mxu1 %v5397_v9  ;;  %v5474_v8 = vld [vmem:[#allocation2 + $0x4e8] ss:$20 sps:$4 sm:$0xff]  }
 0x17b   :  { %2159 = vmatprep.subr.bf16.mxu0 %v5402_v10  ;;  %2331 = vmatprep.subr.bf16.mxu1 %v5405_v11  ;;  %v5470_v9 = vld [vmem:[#allocation2 + $0x128] ss:$20 sps:$4 sm:$0xff]   ;;  %v5473_v11 = vld [vmem:[#allocation2 + $0x650] ss:$20 sps:$4 sm:$0xff]  }
 0x17c   :  { %2189 = vmatprep.mubr.bf16.mxu0 %v6010_v17  ;;  %2361 = vmatprep.mubr.bf16.mxu1 %v6010_v17  ;;  %v5476_v10 = vld [vmem:[#allocation2 + $0x3a8] ss:$20 sps:$4 sm:$0xff]  }
 0x17e   :  { %2160 = vmatpush1.bf16.msra.mxu0 %v5400_v12  ;;  %2332 = vmatpush1.bf16.msra.mxu1 %v5403_v13  ;;  %v5475_v12 = vld [vmem:[#allocation2 + $0x510] ss:$20 sps:$4 sm:$0xff]  }
 0x17f   :  { %2161 = vmatprep.subr.bf16.mxu0 %v5408_v14  ;;  %2333 = vmatprep.subr.bf16.mxu1 %v5411_v15  ;;  %v5479_v13 = vld [vmem:[#allocation2 + $0x790] ss:$20 sps:$4 sm:$0xff]   ;;  %v5477_v14 = vld [vmem:[#allocation2 + $0x678] ss:$20 sps:$4 sm:$0xff]   ;;  %v6011_v15 = vmov 0.0  }
 0x182   :  { %2162 = vmatpush1.bf16.msra.mxu0 %v5406_v16  ;;  %2334 = vmatpush1.bf16.msra.mxu1 %v5409_v18  ;;  %v5478_v16 = vld [vmem:[#allocation2 + $0x538] ss:$20 sps:$4 sm:$0xff]  }
 0x183   :  { %2163 = vmatprep.subr.bf16.mxu0 %v5414_v19  ;;  %2335 = vmatprep.subr.bf16.mxu1 %v5417_v20  ;;  %v5482_v18 = vld [vmem:[#allocation2 + $0x7b8] ss:$20 sps:$4 sm:$0xff]   ;;  %v5757_v19 = vld [vmem:[%s6317_s0] ss:$28 sps:$4 sm:$0xff]   ;;  %v5758_v20 = vld [vmem:[%s6317_s0 + $0x8] ss:$28 sps:$4 sm:$0xff]  }
 0x186   :  { %2164 = vmatpush1.bf16.msra.mxu0 %v5412_v21  ;;  %2336 = vmatpush1.bf16.msra.mxu1 %v5415_v22  ;;  %v5480_v21 = vld [vmem:[#allocation2 + $0x6a0] ss:$20 sps:$4 sm:$0xff]  }
 0x187   :  { %2165 = vmatprep.subr.bf16.mxu0 %v5420_v23  ;;  %2337 = vmatprep.subr.bf16.mxu1 %v5423_v24  ;;  %v5481_v22 = vld [vmem:[#allocation2 + $0x560] ss:$20 sps:$4 sm:$0xff]  }
 0x188   :  { %v5485_v23 = vld [vmem:[#allocation2 + $0x7e0] ss:$20 sps:$4 sm:$0xff]  }
 0x189   :  { %v5759_v24 = vld [vmem:[%s6317_s0 + $0x14] ss:$28 sps:$4 sm:$0xff]  }
 0x18a   :  { %2166 = vmatpush1.bf16.msra.mxu0 %v5418_v25  ;;  %2338 = vmatpush1.bf16.msra.mxu1 %v5421_v26  ;;  %v5483_v25 = vld [vmem:[#allocation2 + $0x6c8] ss:$20 sps:$4 sm:$0xff]  }
 0x18b   :  { %2167 = vmatprep.subr.bf16.mxu0 %v5426_v27  ;;  %2339 = vmatprep.subr.bf16.mxu1 %v5429_v28  ;;  %v5484_v26 = vld [vmem:[#allocation2 + $0x588] ss:$20 sps:$4 sm:$0xff]   ;;  %v5486_v28 = vld [vmem:[#allocation2 + $0x6f0] ss:$20 sps:$4 sm:$0xff]  }
 0x18c   :  { %v5488_v27 = vld [vmem:[#allocation2 + $0x808] ss:$20 sps:$4 sm:$0xff]  }
 0x18e   :  { %2168 = vmatpush1.bf16.msra.mxu0 %v5424_v29  ;;  %2340 = vmatpush1.bf16.msra.mxu1 %v5427_v30  ;;  %v5487_v29 = vld [vmem:[#allocation2 + $0x5b0] ss:$20 sps:$4 sm:$0xff]  }
 0x18f   :  { %2169 = vmatprep.subr.bf16.mxu0 %v5432_v31  ;;  %2341 = vmatprep.subr.bf16.mxu1 %v5435_v32  ;;  %v5491_v30 = vld [vmem:[#allocation2 + $0x830] ss:$20 sps:$4 sm:$0xff]   ;;  %v5489_v31 = vld [vmem:[#allocation2 + $0x718] ss:$20 sps:$4 sm:$0xff]  }
 0x190   :  { %v5490_v32 = vld [vmem:[#allocation2 + $0x5d8] ss:$20 sps:$4 sm:$0xff]  }
 0x192   :  { %2170 = vmatpush1.bf16.msra.mxu0 %v5430_v33  ;;  %2342 = vmatpush1.bf16.msra.mxu1 %v5433_v34  ;;  %v5494_v33 = vld [vmem:[#allocation2 + $0x858] ss:$20 sps:$4 sm:$0xff]   ;;  %v5492_v34 = vld [vmem:[#allocation2 + $0x740] ss:$20 sps:$4 sm:$0xff]  }
 0x193   :  { %2171 = vmatprep.subr.bf16.mxu0 %v5438_v35  ;;  %2343 = vmatprep.subr.bf16.mxu1 %v5441_v36  ;;  %v5493_v35 = vld [vmem:[#allocation2 + $0x600] ss:$20 sps:$4 sm:$0xff]  }
 0x194   :  { %v5497_v36 = vld [vmem:[#allocation2 + $0x880] ss:$20 sps:$4 sm:$0xff]  }
 0x196   :  { %2172 = vmatpush1.bf16.msra.mxu0 %v5436_v37  ;;  %2344 = vmatpush1.bf16.msra.mxu1 %v5439_v38  ;;  %v5495_v37 = vld [vmem:[#allocation2 + $0x768] ss:$20 sps:$4 sm:$0xff]  }
 0x197   :  { %4805 = vmatprep.subr.bf16.mxu0 %v5443_v39  ;;  %4827 = vmatprep.subr.bf16.mxu1 %v5447_v40  ;;  %v5496_v38 = vld [vmem:[#allocation2 + $0x628] ss:$20 sps:$4 sm:$0xff]  }
 0x198   :  { %v5498_v39 = vld [vmem:[#allocation2 + $0x8a8] ss:$20 sps:$4 sm:$0xff]  }
 0x199   :  { %2190 = vmatmul.mubr.bf16.vlgmr.msra.gmra.mrb[0].mxu0 %v6220_v41  ;;  %2362 = vmatmul.mubr.bf16.vlgmr.msra.gmra.mrb[0].mxu1 %v6220_v41  ;;  %v5501_v40 = vld [vmem:[#allocation6 + $0x4] ss:$12 sps:$4 sm:$0xff]  }
 0x19a   :  { %4806 = vmatpush3.bf16.msra.mxu0 %v5444_v42  ;;  %4828 = vmatpush3.bf16.msra.mxu1 %v5448_v43  ;;  %v5526_v42 = vld [vmem:[#allocation6 + $0xc8] ss:$12 sps:$4 sm:$0xff]   ;;  %v5499_v43 = vld [vmem:[#allocation6] ss:$12 sps:$4 sm:$0xff]  }
 0x19b   :  { %4807 = vmatprep.subr.bf16.mxu0 %v5445_v44  ;;  %4829 = vmatprep.subr.bf16.mxu1 %v5451_v45  ;;  %v5527_v44 = vld [vmem:[#allocation6 + $0x8] ss:$12 sps:$4 sm:$0xff]  }
 0x19c   :  { %2404 = vmatprep.mubr.bf16.mxu0 %v5755_v51  ;;  %2445 = vmatprep.mubr.bf16.mxu1 %v5756_v52  ;;  %v5504_v45 = vld [vmem:[#allocation6 + $0x1c] ss:$12 sps:$4 sm:$0xff]   ;;  %v5537_v52 = vld [vmem:[#allocation6 + $0x38] ss:$12 sps:$4 sm:$0xff]  }
 0x19d   :  { %v5505_v51 = vld [vmem:[#allocation6 + $0x30] ss:$12 sps:$4 sm:$0xff]  }
 0x19e   :  { %4808 = vmatpush3.bf16.msra.mxu0 %v5446_v46  ;;  %4830 = vmatpush3.bf16.msra.mxu1 %v5452_v48  ;;  %v5531_v46 = vld [vmem:[#allocation6 + $0xe0] ss:$12 sps:$4 sm:$0xff]  }
 0x19f   :  { %4809 = vmatprep.subr.bf16.mxu0 %v5449_v47  ;;  %4831 = vmatprep.subr.bf16.mxu1 %v5455_v49  ;;  %v5502_v47 = vld [vmem:[#allocation6 + $0x18] ss:$12 sps:$4 sm:$0xff]   ;;  %v5532_v48 = vld [vmem:[#allocation6 + $0x20] ss:$12 sps:$4 sm:$0xff]  }
 0x1a0   :  { %v5507_v49 = vld [vmem:[#allocation6 + $0x34] ss:$12 sps:$4 sm:$0xff]  }
 0x1a2   :  { %4810 = vmatpush3.bf16.msra.mxu0 %v5450_v50  ;;  %4832 = vmatpush3.bf16.msra.mxu1 %v5456_v54  ;;  %v5536_v50 = vld [vmem:[#allocation6 + $0xf8] ss:$12 sps:$4 sm:$0xff]   ;;  %v5541_v54 = vld [vmem:[#allocation6 + $0x110] ss:$12 sps:$4 sm:$0xff]  }
 0x1a3   :  { %4811 = vmatprep.subr.bf16.mxu0 %v5453_v53  ;;  %4833 = vmatprep.subr.bf16.mxu1 %v5459_v55  ;;  %v5510_v53 = vld [vmem:[#allocation6 + $0x4c] ss:$12 sps:$4 sm:$0xff]   ;;  %v5508_v55 = vld [vmem:[#allocation6 + $0x48] ss:$12 sps:$4 sm:$0xff]  }
 0x1a6   :  { %4812 = vmatpush3.bf16.msra.mxu0 %v5454_v56  ;;  %4834 = vmatpush3.bf16.msra.mxu1 %v5460_v58  ;;  %v5542_v56 = vld [vmem:[#allocation6 + $0x50] ss:$12 sps:$4 sm:$0xff]   ;;  %v5547_v58 = vld [vmem:[#allocation6 + $0x68] ss:$12 sps:$4 sm:$0xff]  }
 0x1a7   :  { %4813 = vmatprep.subr.bf16.mxu0 %v5457_v57  ;;  %4835 = vmatprep.subr.bf16.mxu1 %v5463_v59  ;;  %v5513_v57 = vld [vmem:[#allocation6 + $0x64] ss:$12 sps:$4 sm:$0xff]   ;;  %v5516_v59 = vld [vmem:[#allocation6 + $0x7c] ss:$12 sps:$4 sm:$0xff]  }
 0x1aa   :  { %4814 = vmatpush3.bf16.msra.mxu0 %v5458_v60  ;;  %4836 = vmatpush3.bf16.msra.mxu1 %v5464_v62  ;;  %v5551_v60 = vld [vmem:[#allocation6 + $0x140] ss:$12 sps:$4 sm:$0xff]  }
 0x1ab   :  { %4815 = vmatprep.subr.bf16.mxu0 %v5461_v61  ;;  %4837 = vmatprep.subr.bf16.mxu1 %v5467_v63  ;;  %v5514_v61 = vld [vmem:[#allocation6 + $0x78] ss:$12 sps:$4 sm:$0xff]   ;;  %v5519_v62 = vld [vmem:[#allocation6 + $0x94] ss:$12 sps:$4 sm:$0xff]  }
 0x1ac   :  { %v5552_v63 = vld [vmem:[#allocation6 + $0x80] ss:$12 sps:$4 sm:$0xff]  }
 0x1ae   :  { %4816 = vmatpush3.bf16.msra.mxu0 %v5462_v0  ;;  %4838 = vmatpush3.bf16.msra.mxu1 %v5468_v1  ;;  %v5556_v0 = vld [vmem:[#allocation6 + $0x158] ss:$12 sps:$4 sm:$0xff]   ;;  %v5517_v1 = vld [vmem:[#allocation6 + $0x90] ss:$12 sps:$4 sm:$0xff]  }
 0x1af   :  { %4817 = vmatprep.subr.bf16.mxu0 %v5465_v2  ;;  %4839 = vmatprep.subr.bf16.mxu1 %v5471_v3  ;;  %v5557_v2 = vld [vmem:[#allocation6 + $0x98] ss:$12 sps:$4 sm:$0xff]  }
 0x1b0   :  { %v5522_v3 = vld [vmem:[#allocation6 + $0xac] ss:$12 sps:$4 sm:$0xff]  }
 0x1b2   :  { %4818 = vmatpush3.bf16.msra.mxu0 %v5466_v4  ;;  %4840 = vmatpush3.bf16.msra.mxu1 %v5472_v5  ;;  %v5561_v4 = vld [vmem:[#allocation6 + $0x170] ss:$12 sps:$4 sm:$0xff]   ;;  %v5520_v5 = vld [vmem:[#allocation6 + $0xa8] ss:$12 sps:$4 sm:$0xff]  }
 0x1b3   :  { %4819 = vmatprep.subr.bf16.mxu0 %v5469_v7  ;;  %4841 = vmatprep.subr.bf16.mxu1 %v5474_v8  ;;  %v5562_v7 = vld [vmem:[#allocation6 + $0xb0] ss:$12 sps:$4 sm:$0xff]  }
 0x1b4   :  { %v5525_v8 = vld [vmem:[#allocation6 + $0xc4] ss:$12 sps:$4 sm:$0xff]  }
 0x1b6   :  { %4820 = vmatpush3.bf16.msra.mxu0 %v5470_v9  ;;  %4842 = vmatpush3.bf16.msra.mxu1 %v5476_v10  ;;  %v5566_v9 = vld [vmem:[#allocation6 + $0x248] ss:$12 sps:$4 sm:$0xff]   ;;  %v5523_v10 = vld [vmem:[#allocation6 + $0xc0] ss:$12 sps:$4 sm:$0xff]  }
 0x1b7   :  { %4849 = vmatprep.subr.bf16.mxu0 %v5473_v11  ;;  %4964 = vmatprep.subr.bf16.mxu1 %v6011_v15  ;;  %v5530_v11 = vld [vmem:[#allocation6 + $0xdc] ss:$12 sps:$4 sm:$0xff]  }
 0x1b9   :  { %2405 = vmatmul.mubr.bf16.vlgmr.msra.gmra.mrb[4].mxu0 %v5757_v19  ;;  %2446 = vmatmul.mubr.bf16.vlgmr.msra.gmra.mrb[4].mxu1 %v5758_v20  ;;  %v5545_v19 = vld [vmem:[#allocation6 + $0x124] ss:$12 sps:$4 sm:$0xff]   ;;  %v5543_v20 = vld [vmem:[#allocation6 + $0x120] ss:$12 sps:$4 sm:$0xff]  }
 0x1ba   :  { %4850 = vmatpush3.bf16.msra.mxu0 %v5475_v12  ;;  %4965 = vmatpush3.bf16.msra.mxu1 %v5479_v13  ;;  %v5528_v12 = vld [vmem:[#allocation6 + $0xd8] ss:$12 sps:$4 sm:$0xff]   ;;  %v5535_v13 = vld [vmem:[#allocation6 + $0xf4] ss:$12 sps:$4 sm:$0xff]  }
 0x1bb   :  { %4851 = vmatprep.subr.bf16.mxu0 %v5477_v14  ;;  %4966 = vmatprep.subr.bf16.mxu1 %v6011_v15  ;;  %v5533_v14 = vld [vmem:[#allocation6 + $0xf0] ss:$12 sps:$4 sm:$0xff]  }
 0x1bc   :  { %2486 = vmatprep.mubr.bf16.mxu0 %v5759_v24  ;;  %4980 = vmatprep.mubr.msk.bf16.mxu1 %vm6012_vm0, %v6011_v15  ;;  %v5553_v24 = vld [vmem:[#allocation6 + $0x150] ss:$12 sps:$4 sm:$0xff]  }
 0x1be   :  { %4852 = vmatpush3.bf16.msra.mxu0 %v5478_v16  ;;  %4967 = vmatpush3.bf16.msra.mxu1 %v5482_v18  ;;  %v5540_v16 = vld [vmem:[#allocation6 + $0x10c] ss:$12 sps:$4 sm:$0xff]   ;;  %v5538_v18 = vld [vmem:[#allocation6 + $0x108] ss:$12 sps:$4 sm:$0xff]  }
 0x1bf   :  { %4853 = vmatprep.subr.bf16.mxu0 %v5480_v21  ;;  %4968 = vmatprep.subr.bf16.mxu1 %v6011_v15  ;;  %v5550_v21 = vld [vmem:[#allocation6 + $0x13c] ss:$12 sps:$4 sm:$0xff]  }
 0x1c2   :  { %4854 = vmatpush3.bf16.msra.mxu0 %v5481_v22  ;;  %4969 = vmatpush3.bf16.msra.mxu1 %v5485_v23  ;;  %v5548_v22 = vld [vmem:[#allocation6 + $0x138] ss:$12 sps:$4 sm:$0xff]   ;;  %v5555_v23 = vld [vmem:[#allocation6 + $0x154] ss:$12 sps:$4 sm:$0xff]  }
 0x1c3   :  { %4855 = vmatprep.subr.bf16.mxu0 %v5483_v25  ;;  %4970 = vmatprep.subr.bf16.mxu1 %v6011_v15  ;;  %v5560_v25 = vld [vmem:[#allocation6 + $0x16c] ss:$12 sps:$4 sm:$0xff]  }
 0x1c6   :  { %4856 = vmatpush3.bf16.msra.mxu0 %v5484_v26  ;;  %4971 = vmatpush3.bf16.msra.mxu1 %v5488_v27  ;;  %v5558_v26 = vld [vmem:[#allocation6 + $0x168] ss:$12 sps:$4 sm:$0xff]   ;;  %v5565_v27 = vld [vmem:[#allocation6 + $0x184] ss:$12 sps:$4 sm:$0xff]  }
 0x1c7   :  { %4857 = vmatprep.subr.bf16.mxu0 %v5486_v28  ;;  %4972 = vmatprep.subr.bf16.mxu1 %v6011_v15  ;;  %v511_v28 = vlaneseq }
 0x1ca   :  { %4858 = vmatpush3.bf16.msra.mxu0 %v5487_v29  ;;  %4973 = vmatpush3.bf16.msra.mxu1 %v5491_v30  ;;  %v6251_v29 = vshrl.u32 %v511_v28, 7  ;;  %v5595_v28 = vld [vmem:[#allocation6 + $0x214] ss:$12 sps:$4 sm:$0xff]  }
 0x1cb   :  { %4859 = vmatprep.subr.bf16.mxu0 %v5489_v31  ;;  %4974 = vmatprep.subr.bf16.mxu1 %v6011_v15 }
 0x1cc   :  { %v6254_v30 = vsub.s32 0, %v6251_v29  ;;  %v521_v31 = vsub.s32 2, %v6251_v29 }
 0x1ce   :  { %4860 = vmatpush3.bf16.msra.mxu0 %v5490_v32  ;;  %4975 = vmatpush3.bf16.msra.mxu1 %v5494_v33  ;;  %v6257_v32 = vld [vmem:[#allocation4] sm:$0x1f]  ;;  %v6260_v33 = vsub.s32 1, %v6251_v29 }
 0x1cf   :  { %4861 = vmatprep.subr.bf16.mxu0 %v5492_v34  ;;  %4976 = vmatprep.subr.bf16.mxu1 %v6011_v15  ;;  %v525_v34 = vsub.s32 3, %v6251_v29 }
 0x1d2   :  { %4862 = vmatpush3.bf16.msra.mxu0 %v5493_v35  ;;  %4977 = vmatpush3.bf16.msra.mxu1 %v5497_v36  ;;  %v514_v35 = vrot.slane %v6257_v32, %v6254_v30  ;;  %v522_v36 = vrot.slane %v6257_v32, %v521_v31 }
 0x1d3   :  { %4863 = vmatprep.subr.bf16.mxu0 %v5495_v37  ;;  %4978 = vmatprep.subr.bf16.mxu1 %v6011_v15  ;;  %v518_v37 = vrot.slane %v6257_v32, %v6260_v33 }
 0x1d6   :  { %4864 = vmatpush3.bf16.msra.mxu0 %v5496_v38  ;;  %4979 = vmatpush3.bf16.msra.mxu1 %v5498_v39  ;;  %v526_v38 = vrot.slane %v6257_v32, %v525_v34  ;;  %v5596_v34 = vld [vmem:[#allocation6 + $0x2d8] ss:$12 sps:$4 sm:$0xff]  }
 0x1d7   :  { %3368 = vmatprep.subr.bf16.mxu0 %v5501_v40  ;;  %4880 = vmatprep.subr.bf16.mxu1 %v5526_v42 }
 0x1d9   :  { %2487 = vmatmul.mubr.bf16.vlgmr.msra.gmra.mrb[8].mxu0 %v6211_v6  ;;  %4981 = vmatmul.mubr.bf16.vlgmr.msra.gmra.mrb[8].mxu1 %v6220_v41  ;;  %v5546_v6 = vld [vmem:[#allocation6 + $0x128] ss:$12 sps:$4 sm:$0xff]   ;;  %v5511_v41 = vld [vmem:[#allocation6 + $0x60] ss:$12 sps:$4 sm:$0xff]  }
 0x1da   :  { %3369 = vmatpush1.bf16.msra.mxu0 %v5499_v43  ;;  %4881 = vmatpush3.bf16.msra.mxu1 %v5527_v44 }
 0x1db   :  { %3370 = vmatprep.subr.bf16.mxu0 %v5504_v45  ;;  %4882 = vmatprep.subr.bf16.mxu1 %v5531_v46 }
 0x1de   :  { %3371 = vmatpush1.bf16.msra.mxu0 %v5502_v47  ;;  %4883 = vmatpush3.bf16.msra.mxu1 %v5532_v48 }
 0x1df   :  { %3372 = vmatprep.subr.bf16.mxu0 %v5507_v49  ;;  %4884 = vmatprep.subr.bf16.mxu1 %v5536_v50 }
 0x1e2   :  { %3373 = vmatpush1.bf16.msra.mxu0 %v5505_v51  ;;  %4885 = vmatpush3.bf16.msra.mxu1 %v5537_v52 }
 0x1e3   :  { %3374 = vmatprep.subr.bf16.mxu0 %v5510_v53  ;;  %4886 = vmatprep.subr.bf16.mxu1 %v5541_v54 }
 0x1e6   :  { %3375 = vmatpush1.bf16.msra.mxu0 %v5508_v55  ;;  %4887 = vmatpush3.bf16.msra.mxu1 %v5542_v56 }
 0x1e7   :  { %3376 = vmatprep.subr.bf16.mxu0 %v5513_v57  ;;  %4888 = vmatprep.subr.bf16.mxu1 %v5546_v6 }
 0x1ea   :  { %3377 = vmatpush1.bf16.msra.mxu0 %v5511_v41  ;;  %4889 = vmatpush3.bf16.msra.mxu1 %v5547_v58 }
 0x1eb   :  { %3378 = vmatprep.subr.bf16.mxu0 %v5516_v59  ;;  %4890 = vmatprep.subr.bf16.mxu1 %v5551_v60 }
 0x1ee   :  { %3379 = vmatpush1.bf16.msra.mxu0 %v5514_v61  ;;  %4891 = vmatpush3.bf16.msra.mxu1 %v5552_v63 }
 0x1ef   :  { %3380 = vmatprep.subr.bf16.mxu0 %v5519_v62  ;;  %4892 = vmatprep.subr.bf16.mxu1 %v5556_v0 }
 0x1f2   :  { %3381 = vmatpush1.bf16.msra.mxu0 %v5517_v1  ;;  %4893 = vmatpush3.bf16.msra.mxu1 %v5557_v2  ;;  %v5563_v2 = vld [vmem:[#allocation6 + $0x180] ss:$12 sps:$4 sm:$0xff]  }
 0x1f3   :  { %3382 = vmatprep.subr.bf16.mxu0 %v5522_v3  ;;  %4894 = vmatprep.subr.bf16.mxu1 %v5561_v4  ;;  %v5567_v3 = vld [vmem:[#allocation6 + $0x188] ss:$12 sps:$4 sm:$0xff]  }
 0x1f4   :  { %v5570_v4 = vld [vmem:[#allocation6 + $0x19c] ss:$12 sps:$4 sm:$0xff]  }
 0x1f6   :  { %3383 = vmatpush1.bf16.msra.mxu0 %v5520_v5  ;;  %4895 = vmatpush3.bf16.msra.mxu1 %v5562_v7  ;;  %v5571_v5 = vld [vmem:[#allocation6 + $0x260] ss:$12 sps:$4 sm:$0xff]   ;;  %v5568_v7 = vld [vmem:[#allocation6 + $0x198] ss:$12 sps:$4 sm:$0xff]  }
 0x1f7   :  { %3384 = vmatprep.subr.bf16.mxu0 %v5525_v8  ;;  %4902 = vmatprep.subr.bf16.mxu1 %v5566_v9  ;;  %v5572_v8 = vld [vmem:[#allocation6 + $0x1a0] ss:$12 sps:$4 sm:$0xff]  }
 0x1f8   :  { %v5575_v9 = vld [vmem:[#allocation6 + $0x1b4] ss:$12 sps:$4 sm:$0xff]  }
 0x1fa   :  { %3385 = vmatpush1.bf16.msra.mxu0 %v5523_v10  ;;  %v5576_v10 = vld [vmem:[#allocation6 + $0x278] ss:$12 sps:$4 sm:$0xff]  }
 0x1fb   :  { %3386 = vmatprep.subr.bf16.mxu0 %v5530_v11  ;;  %v5573_v11 = vld [vmem:[#allocation6 + $0x1b0] ss:$12 sps:$4 sm:$0xff]  }
 0x1fe   :  { %3387 = vmatpush1.bf16.msra.mxu0 %v5528_v12  ;;  %v5577_v12 = vld [vmem:[#allocation6 + $0x1b8] ss:$12 sps:$4 sm:$0xff]  }
 0x1ff   :  { %3388 = vmatprep.subr.bf16.mxu0 %v5535_v13  ;;  %v5580_v13 = vld [vmem:[#allocation6 + $0x1cc] ss:$12 sps:$4 sm:$0xff]  }
 0x202   :  { %3389 = vmatpush1.bf16.msra.mxu0 %v5533_v14  ;;  %v5581_v14 = vld [vmem:[#allocation6 + $0x290] ss:$12 sps:$4 sm:$0xff]  }
 0x203   :  { %3390 = vmatprep.subr.bf16.mxu0 %v5540_v16  ;;  %v5578_v16 = vld [vmem:[#allocation6 + $0x1c8] ss:$12 sps:$4 sm:$0xff]  }
 0x206   :  { %3391 = vmatpush1.bf16.msra.mxu0 %v5538_v18  ;;  %v5582_v18 = vld [vmem:[#allocation6 + $0x1d0] ss:$12 sps:$4 sm:$0xff]  }
 0x207   :  { %3392 = vmatprep.subr.bf16.mxu0 %v5545_v19  ;;  %v5585_v19 = vld [vmem:[#allocation6 + $0x1e4] ss:$12 sps:$4 sm:$0xff]  }
 0x20a   :  { %3393 = vmatpush1.bf16.msra.mxu0 %v5543_v20  ;;  %v5586_v20 = vld [vmem:[#allocation6 + $0x2a8] ss:$12 sps:$4 sm:$0xff]  }
 0x20b   :  { %3394 = vmatprep.subr.bf16.mxu0 %v5550_v21  ;;  %v5583_v21 = vld [vmem:[#allocation6 + $0x1e0] ss:$12 sps:$4 sm:$0xff]  }
 0x20e   :  { %3395 = vmatpush1.bf16.msra.mxu0 %v5548_v22  ;;  %v5587_v22 = vld [vmem:[#allocation6 + $0x1e8] ss:$12 sps:$4 sm:$0xff]  }
 0x20f   :  { %3396 = vmatprep.subr.bf16.mxu0 %v5555_v23  ;;  %v5590_v23 = vld [vmem:[#allocation6 + $0x1fc] ss:$12 sps:$4 sm:$0xff]  }
 0x212   :  { %3397 = vmatpush1.bf16.msra.mxu0 %v5553_v24  ;;  %v5591_v24 = vld [vmem:[#allocation6 + $0x2c0] ss:$12 sps:$4 sm:$0xff]  }
 0x213   :  { %3398 = vmatprep.subr.bf16.mxu0 %v5560_v25  ;;  %v5588_v25 = vld [vmem:[#allocation6 + $0x1f8] ss:$12 sps:$4 sm:$0xff]  }
 0x216   :  { %3399 = vmatpush1.bf16.msra.mxu0 %v5558_v26  ;;  %v5592_v26 = vld [vmem:[#allocation6 + $0x200] ss:$12 sps:$4 sm:$0xff]  }
 0x217   :  { %3411 = vmatprep.subr.bf16.mxu0 %v5565_v27  ;;  %v529_v27 = vsub.s32 4, %v6251_v29 }
 0x26c   :  { %v2191_v39 = vpop.f32.mrb[0].mxu0  ;;  %v2363_v40 = vpop.f32.mrb[0].mxu1 }
 0x26d   :  { %v5024_v42 = vadd.f32 %v2191_v39, %v514_v35  ;;  %v5028_v43 = vadd.f32 %v2363_v40, %v522_v36  ;;  %v2193_v44 = vpop.f32.mrb[1].mxu0  ;;  %v2365_v45 = vpop.f32.mrb[1].mxu1  ;;  %v5600_v40 = vld [vmem:[#allocation6 + $0x22c] ss:$12 sps:$4 sm:$0xff]  }
 0x26e   :  { %v5025_v46 = vadd.f32 %v2193_v44, %v518_v37  ;;  %v5029_v47 = vadd.f32 %v2365_v45, %v526_v38  ;;  %v2195_v48 = vpop.f32.mrb[2].mxu0  ;;  %v2367_v49 = vpop.f32.mrb[2].mxu1 }
 0x26f   :  { %v5026_v50 = vadd.f32 %v2195_v48, %v514_v35  ;;  %v5030_v51 = vadd.f32 %v2367_v49, %v522_v36  ;;  %v2197_v52 = vpop.f32.mrb[3].mxu0  ;;  %v2369_v53 = vpop.f32.mrb[3].mxu1  ;;  %v2536_v56 = vmax.f32 %v5024_v42, 0.0  ;;  %v2538_v57 = vmax.f32 %v5028_v43, 0.0  ;;  %v5593_v35 = vld [vmem:[#allocation6 + $0x210] ss:$12 sps:$4 sm:$0xff]  }
 0x270   :  { %v5027_v54 = vadd.f32 %v2197_v52, %v518_v37  ;;  %v5031_v55 = vadd.f32 %v2369_v53, %v526_v38  ;;  %v2537_v58 = vmax.f32 %v5025_v46, 0.0  ;;  %v2539_v59 = vmax.f32 %v5029_v47, 0.0  ;;  %v5597_v36 = vld [vmem:[#allocation6 + $0x218] ss:$12 sps:$4 sm:$0xff]   ;;  %v5601_v42 = vld [vmem:[#allocation6 + $0x2f0] ss:$12 sps:$4 sm:$0xff]  }
 0x271   :  { %v2541_v6 = vmax.f32 %v5026_v50, 0.0  ;;  %v2543_v41 = vmax.f32 %v5030_v51, 0.0  ;;  %v530_v38 = vrot.slane %v6257_v32, %v529_v27  ;;  %v5598_v51 = vld [vmem:[#allocation6 + $0x228] ss:$12 sps:$4 sm:$0xff]   ;;  %v5602_v52 = vld [vmem:[#allocation6 + $0x230] ss:$12 sps:$4 sm:$0xff]  }
 0x272   :  { %v2542_v60 = vmax.f32 %v5027_v54, 0.0  ;;  %v2544_v61 = vmax.f32 %v5031_v55, 0.0  ;;  %v5605_v55 = vld [vmem:[#allocation6 + $0x244] ss:$12 sps:$4 sm:$0xff]  }
 0x273   :  { %v2546_v62 = vpack.c.bf16 %v2541_v6, %v2536_v56  ;;  %v6271_v63 = vpack.c.bf16 %v2543_v41, %v2538_v57  ;;  %v5603_v6 = vld [vmem:[#allocation6 + $0x240] ss:$12 sps:$4 sm:$0xff]   ;;  %v5609_v41 = vld [vmem:[#allocation6 + $0x308] ss:$12 sps:$4 sm:$0xff]  }
 0x274   :  { %v2547_v0 = vpack.c.bf16 %v2542_v60, %v2537_v58  ;;  %v2549_v1 = vpack.c.bf16 %v2544_v61, %v2539_v59  ;;  %v5608_v59 = vld [vmem:[#allocation6 + $0x25c] ss:$12 sps:$4 sm:$0xff]   ;;  %v5606_v60 = vld [vmem:[#allocation6 + $0x258] ss:$12 sps:$4 sm:$0xff]   ;;  %v5613_v61 = vld [vmem:[#allocation6 + $0x320] ss:$12 sps:$4 sm:$0xff]  }
 0x276   :  { %3400 = vmatprep.mubr.bf16.mxu0 %v2547_v0  ;;  %3529 = vmatprep.mubr.bf16.mxu1 %v2547_v0  ;;  %v5610_v0 = vld [vmem:[#allocation6 + $0x270] ss:$12 sps:$4 sm:$0xff]  }
 0x277   :  { %3401 = vmatmul.mubr.bf16.vlgmr.msra.gmra.mrb[12].mxu0 %v2546_v62  ;;  %3530 = vmatmul.mubr.bf16.vlgmr.msra.gmra.mrb[12].mxu1 %v2546_v62  ;;  %v5612_v62 = vld [vmem:[#allocation6 + $0x274] ss:$12 sps:$4 sm:$0xff]  }
 0x278   :  { %3412 = vmatpush1.bf16.msra.mxu0 %v5563_v2  ;;  %4903 = vmatpush3.bf16.msra.mxu1 %v5567_v3  ;;  %v5616_v2 = vld [vmem:[#allocation6 + $0x28c] ss:$12 sps:$4 sm:$0xff]   ;;  %v5614_v3 = vld [vmem:[#allocation6 + $0x288] ss:$12 sps:$4 sm:$0xff]  }
 0x279   :  { %3443 = vmatprep.mubr.bf16.mxu0 %v2549_v1  ;;  %3570 = vmatprep.mubr.bf16.mxu1 %v2549_v1  ;;  %v5617_v1 = vld [vmem:[#allocation6 + $0x338] ss:$12 sps:$4 sm:$0xff]  }
 0x27a   :  { %3413 = vmatprep.subr.bf16.mxu0 %v5570_v4  ;;  %4904 = vmatprep.subr.bf16.mxu1 %v5571_v5  ;;  %v5621_v4 = vld [vmem:[#allocation6 + $0x350] ss:$12 sps:$4 sm:$0xff]  }
 0x27b   :  { %v5620_v5 = vld [vmem:[#allocation6 + $0x2a4] ss:$12 sps:$4 sm:$0xff]  }
 0x27c   :  { %3414 = vmatpush1.bf16.msra.mxu0 %v5568_v7  ;;  %4905 = vmatpush3.bf16.msra.mxu1 %v5572_v8  ;;  %v5618_v7 = vld [vmem:[#allocation6 + $0x2a0] ss:$12 sps:$4 sm:$0xff]   ;;  %v5625_v8 = vld [vmem:[#allocation6 + $0x368] ss:$12 sps:$4 sm:$0xff]  }
 0x27d   :  { %3415 = vmatprep.subr.bf16.mxu0 %v5575_v9  ;;  %4906 = vmatprep.subr.bf16.mxu1 %v5576_v10  ;;  %v5624_v9 = vld [vmem:[#allocation6 + $0x2bc] ss:$12 sps:$4 sm:$0xff]   ;;  %v5622_v10 = vld [vmem:[#allocation6 + $0x2b8] ss:$12 sps:$4 sm:$0xff]  }
 0x280   :  { %3416 = vmatpush1.bf16.msra.mxu0 %v5573_v11  ;;  %4907 = vmatpush3.bf16.msra.mxu1 %v5577_v12  ;;  %v5629_v11 = vld [vmem:[#allocation6 + $0x380] ss:$12 sps:$4 sm:$0xff]  }
 0x281   :  { %3417 = vmatprep.subr.bf16.mxu0 %v5580_v13  ;;  %4908 = vmatprep.subr.bf16.mxu1 %v5581_v14  ;;  %v5628_v12 = vld [vmem:[#allocation6 + $0x2d4] ss:$12 sps:$4 sm:$0xff]   ;;  %v5626_v14 = vld [vmem:[#allocation6 + $0x2d0] ss:$12 sps:$4 sm:$0xff]  }
 0x284   :  { %3418 = vmatpush1.bf16.msra.mxu0 %v5578_v16  ;;  %4909 = vmatpush3.bf16.msra.mxu1 %v5582_v18  ;;  %v5633_v18 = vld [vmem:[#allocation6 + $0x398] ss:$12 sps:$4 sm:$0xff]  }
 0x285   :  { %3419 = vmatprep.subr.bf16.mxu0 %v5585_v19  ;;  %4910 = vmatprep.subr.bf16.mxu1 %v5586_v20 }
 0x288   :  { %3420 = vmatpush1.bf16.msra.mxu0 %v5583_v21  ;;  %4911 = vmatpush3.bf16.msra.mxu1 %v5587_v22  ;;  %v5632_v21 = vld [vmem:[#allocation6 + $0x2ec] ss:$12 sps:$4 sm:$0xff]  }
 0x289   :  { %3421 = vmatprep.subr.bf16.mxu0 %v5590_v23  ;;  %4912 = vmatprep.subr.bf16.mxu1 %v5591_v24 }
 0x28c   :  { %3422 = vmatpush1.bf16.msra.mxu0 %v5588_v25  ;;  %4913 = vmatpush3.bf16.msra.mxu1 %v5592_v26  ;;  %v4821_v37 = vpop.f32.mrb[4].mxu0  ;;  %v4843_v39 = vpop.f32.mrb[4].mxu1 }
 0x28d   :  { %3423 = vmatprep.subr.bf16.mxu0 %v5595_v28  ;;  %4914 = vmatprep.subr.bf16.mxu1 %v5596_v34  ;;  %v4822_v43 = vpop.f32.mrb[5].mxu0  ;;  %v4844_v44 = vpop.f32.mrb[5].mxu1  ;;  %v5630_v34 = vld [vmem:[#allocation6 + $0x2e8] ss:$12 sps:$4 sm:$0xff]  }
 0x28e   :  { %v4823_v45 = vadd.f32 %v4822_v43, %v4821_v37  ;;  %v4824_v46 = vpop.f32.mrb[6].mxu0  ;;  %v4845_v47 = vadd.f32 %v4844_v44, %v4843_v39  ;;  %v4846_v48 = vpop.f32.mrb[6].mxu1 }
 0x28f   :  { %v4825_v49 = vpop.f32.mrb[7].mxu0  ;;  %v4847_v50 = vpop.f32.mrb[7].mxu1 }
 0x290   :  { %3424 = vmatpush1.bf16.msra.mxu0 %v5593_v35  ;;  %4915 = vmatpush3.bf16.msra.mxu1 %v5597_v36  ;;  %v2407_v53 = vadd.f32 %v4823_v45, %v530_v38  ;;  %v4826_v54 = vadd.f32 %v4825_v49, %v4824_v46  ;;  %v4848_v32 = vadd.f32 %v4847_v50, %v4846_v48  ;;  %v5637_v35 = vld [vmem:[#allocation6 + $0x3b0] ss:$12 sps:$4 sm:$0xff]   ;;  %v5638_v46 = vld [vmem:[#allocation6 + $0x318] ss:$12 sps:$4 sm:$0xff]   ;;  %v5644_v50 = vld [vmem:[#allocation6 + $0x348] ss:$12 sps:$4 sm:$0xff]  }
 0x291   :  { %3425 = vmatprep.subr.bf16.mxu0 %v5600_v40  ;;  %4916 = vmatprep.subr.bf16.mxu1 %v5601_v42  ;;  %v5636_v36 = vld [vmem:[#allocation6 + $0x304] ss:$12 sps:$4 sm:$0xff]   ;;  %v5634_v40 = vld [vmem:[#allocation6 + $0x300] ss:$12 sps:$4 sm:$0xff]   ;;  %v5640_v42 = vld [vmem:[#allocation6 + $0x31c] ss:$12 sps:$4 sm:$0xff]  }
 0x292   :  { %v2410_v56 = vadd.f32 %v4826_v54, %v530_v38  ;;  %v6275_v57 = vadd.f32 %v4845_v47, %v2407_v53  ;;  %v5643_v47 = vld [vmem:[#allocation6 + $0x334] ss:$12 sps:$4 sm:$0xff]   ;;  %v5641_v48 = vld [vmem:[#allocation6 + $0x330] ss:$12 sps:$4 sm:$0xff]   ;;  %v5646_v49 = vld [vmem:[#allocation6 + $0x34c] ss:$12 sps:$4 sm:$0xff]  }
 0x293   :  { %v5650_v53 = vld [vmem:[#allocation6 + $0x378] ss:$12 sps:$4 sm:$0xff]   ;;  %v5655_v54 = vld [vmem:[#allocation6 + $0x394] ss:$12 sps:$4 sm:$0xff]  }
 0x294   :  { %3426 = vmatpush1.bf16.msra.mxu0 %v5598_v51  ;;  %4917 = vmatpush3.bf16.msra.mxu1 %v5602_v52  ;;  %v6277_v58 = vadd.f32 %v4848_v32, %v2410_v56  ;;  %v5649_v51 = vld [vmem:[#allocation6 + $0x364] ss:$12 sps:$4 sm:$0xff]   ;;  %v5647_v52 = vld [vmem:[#allocation6 + $0x360] ss:$12 sps:$4 sm:$0xff]   ;;  %v5656_v56 = vld [vmem:[#allocation6 + $0x3a8] ss:$12 sps:$4 sm:$0xff]  }
 0x295   :  { %3427 = vmatprep.subr.bf16.mxu0 %v5605_v55  ;;  %4984 = vmatprep.subr.bf16.mxu1 %v6011_v15  ;;  %v5653_v32 = vld [vmem:[#allocation6 + $0x390] ss:$12 sps:$4 sm:$0xff]   ;;  %v5658_v55 = vld [vmem:[#allocation6 + $0x3ac] ss:$12 sps:$4 sm:$0xff]  }
 0x297   :  { %3571 = vmatmul.mubr.bf16.vlgmr.msra.gmra.mrb[16].mxu1 %v6271_v63 }
 0x298   :  { %3428 = vmatpush1.bf16.msra.mxu0 %v5603_v6  ;;  %4985 = vmatpush3.bf16.msra.mxu1 %v5609_v41  ;;  %v5661_v6 = vld [vmem:[#allocation9 + $0x4] ss:$8 sps:$4 sm:$0xff]   ;;  %v5664_v41 = vld [vmem:[#allocation9 + $0x14] ss:$8 sps:$4 sm:$0xff]  }
 0x299   :  { %3429 = vmatprep.subr.bf16.mxu0 %v5608_v59  ;;  %4986 = vmatprep.subr.bf16.mxu1 %v6011_v15  ;;  %v5667_v59 = vld [vmem:[#allocation9 + $0x24] ss:$8 sps:$4 sm:$0xff]  }
 0x29a   :  { %5000 = vmatprep.mubr.msk.bf16.mxu1 %vm6012_vm0, %v6011_v15 }
 0x29c   :  { %3430 = vmatpush1.bf16.msra.mxu0 %v5606_v60  ;;  %4987 = vmatpush3.bf16.msra.mxu1 %v5613_v61  ;;  %v5665_v60 = vld [vmem:[#allocation9 + $0x20] ss:$8 sps:$4 sm:$0xff]   ;;  %v5670_v61 = vld [vmem:[#allocation9 + $0x34] ss:$8 sps:$4 sm:$0xff]  }
 0x29d   :  { %3431 = vmatprep.subr.bf16.mxu0 %v5612_v62  ;;  %4988 = vmatprep.subr.bf16.mxu1 %v6011_v15  ;;  %v5668_v62 = vld [vmem:[#allocation9 + $0x30] ss:$8 sps:$4 sm:$0xff]  }
 0x2a0   :  { %3432 = vmatpush1.bf16.msra.mxu0 %v5610_v0  ;;  %4989 = vmatpush3.bf16.msra.mxu1 %v5617_v1  ;;  %v5673_v0 = vld [vmem:[#allocation9 + $0x44] ss:$8 sps:$4 sm:$0xff]   ;;  %v5671_v1 = vld [vmem:[#allocation9 + $0x40] ss:$8 sps:$4 sm:$0xff]  }
 0x2a1   :  { %3433 = vmatprep.subr.bf16.mxu0 %v5616_v2  ;;  %4990 = vmatprep.subr.bf16.mxu1 %v6011_v15  ;;  %v5676_v2 = vld [vmem:[#allocation9 + $0x54] ss:$8 sps:$4 sm:$0xff]  }
 0x2a4   :  { %3434 = vmatpush1.bf16.msra.mxu0 %v5614_v3  ;;  %4991 = vmatpush3.bf16.msra.mxu1 %v5621_v4  ;;  %v5674_v3 = vld [vmem:[#allocation9 + $0x50] ss:$8 sps:$4 sm:$0xff]   ;;  %v5679_v4 = vld [vmem:[#allocation9 + $0x64] ss:$8 sps:$4 sm:$0xff]  }
 0x2a5   :  { %3435 = vmatprep.subr.bf16.mxu0 %v5620_v5  ;;  %4992 = vmatprep.subr.bf16.mxu1 %v6011_v15  ;;  %v5677_v5 = vld [vmem:[#allocation9 + $0x60] ss:$8 sps:$4 sm:$0xff]  }
 0x2a8   :  { %3436 = vmatpush1.bf16.msra.mxu0 %v5618_v7  ;;  %4993 = vmatpush3.bf16.msra.mxu1 %v5625_v8  ;;  %v5682_v7 = vld [vmem:[#allocation9 + $0x74] ss:$8 sps:$4 sm:$0xff]   ;;  %v5680_v8 = vld [vmem:[#allocation9 + $0x70] ss:$8 sps:$4 sm:$0xff]  }
 0x2a9   :  { %3437 = vmatprep.subr.bf16.mxu0 %v5624_v9  ;;  %4994 = vmatprep.subr.bf16.mxu1 %v6011_v15  ;;  %v5685_v9 = vld [vmem:[#allocation9 + $0x84] ss:$8 sps:$4 sm:$0xff]  }
 0x2ac   :  { %3438 = vmatpush1.bf16.msra.mxu0 %v5622_v10  ;;  %v4865_v13 = vpop.f32.mrb[8].mxu0  ;;  %4995 = vmatpush3.bf16.msra.mxu1 %v5629_v11  ;;  %v2529_v16 = vpop.f32.mrb[8].mxu1  ;;  %v5683_v10 = vld [vmem:[#allocation9 + $0x80] ss:$8 sps:$4 sm:$0xff]   ;;  %v5688_v11 = vld [vmem:[#allocation9 + $0x94] ss:$8 sps:$4 sm:$0xff]  }
 0x2ad   :  { %v4866_v19 = vpop.f32.mrb[9].mxu0  ;;  %3439 = vmatprep.subr.bf16.mxu0 %v5628_v12  ;;  %v4982_v20 = vpop.f32.mrb[9].mxu1  ;;  %4996 = vmatprep.subr.bf16.mxu1 %v6011_v15  ;;  %v5686_v12 = vld [vmem:[#allocation9 + $0x90] ss:$8 sps:$4 sm:$0xff]  }
 0x2ae   :  { %v4867_v22 = vadd.f32 %v4866_v19, %v4865_v13  ;;  %v4868_v23 = vpop.f32.mrb[10].mxu0  ;;  %v2532_v24 = vpop.f32.mrb[10].mxu1  ;;  %v5691_v13 = vld [vmem:[#allocation9 + $0xa4] ss:$8 sps:$4 sm:$0xff]   ;;  %v5695_v20 = vld [vmem:[#allocation9 + $0xc0] ss:$8 sps:$4 sm:$0xff]  }
 0x2af   :  { %v4869_v25 = vpop.f32.mrb[11].mxu0  ;;  %v4983_v26 = vpop.f32.mrb[11].mxu1  ;;  %v5697_v19 = vld [vmem:[#allocation9 + $0xc4] ss:$8 sps:$4 sm:$0xff]  }
 0x2b0   :  { %v4870_v27 = vadd.f32 %v4869_v25, %v4868_v23  ;;  %3440 = vmatpush1.bf16.msra.mxu0 %v5626_v14  ;;  %v2489_v28 = vadd.f32 %v4867_v22, %v6275_v57  ;;  %4997 = vmatpush3.bf16.msra.mxu1 %v5633_v18  ;;  %v5659_v57 = vld [vmem:[#allocation9] ss:$8 sps:$4 sm:$0xff]   ;;  %v5692_v18 = vld [vmem:[#allocation9 + $0xb0] ss:$8 sps:$4 sm:$0xff]   ;;  %v5703_v23 = vld [vmem:[#allocation9 + $0xe4] ss:$8 sps:$4 sm:$0xff]  }
 0x2b1   :  { %3441 = vmatprep.subr.bf16.mxu0 %v5632_v21  ;;  %4998 = vmatprep.subr.bf16.mxu1 %v6011_v15  ;;  %v5689_v14 = vld [vmem:[#allocation9 + $0xa0] ss:$8 sps:$4 sm:$0xff]   ;;  %v5700_v21 = vld [vmem:[#allocation9 + $0xd4] ss:$8 sps:$4 sm:$0xff]   ;;  %v5698_v22 = vld [vmem:[#allocation9 + $0xd0] ss:$8 sps:$4 sm:$0xff]  }
 0x2b2   :  { %v2530_v37 = vadd.f32 %v2529_v16, %v2489_v28  ;;  %v2492_v38 = vadd.f32 %v4870_v27, %v6277_v58  ;;  %v5662_v58 = vld [vmem:[#allocation9 + $0x10] ss:$8 sps:$4 sm:$0xff]   ;;  %v5694_v16 = vld [vmem:[#allocation9 + $0xb4] ss:$8 sps:$4 sm:$0xff]   ;;  %v5709_v27 = vld [vmem:[#allocation9 + $0x104] ss:$8 sps:$4 sm:$0xff]  }
 0x2b3   :  { %v5706_v25 = vld [vmem:[#allocation9 + $0xf4] ss:$8 sps:$4 sm:$0xff]   ;;  %v5704_v26 = vld [vmem:[#allocation9 + $0xf0] ss:$8 sps:$4 sm:$0xff]  }
 0x2b4   :  { %v2533_v39 = vadd.f32 %v2532_v24, %v2492_v38  ;;  %3442 = vmatpush1.bf16.msra.mxu0 %v5630_v34  ;;  %4999 = vmatpush3.bf16.msra.mxu1 %v5637_v35  ;;  %v2540_v43 = vmax.f32 %v2530_v37, 0.0  ;;  %v5701_v24 = vld [vmem:[#allocation9 + $0xe0] ss:$8 sps:$4 sm:$0xff]  }
 0x2b5   :  { %3454 = vmatprep.subr.bf16.mxu0 %v5636_v36  ;;  %3929 = vmatprep.subr.bf16.mxu1 %v5661_v6 }
 0x2b6   :  { %v2545_v44 = vmax.f32 %v2533_v39, 0.0  ;;  %v5731_v39 = vld [vmem:[#allocation12 + $0x40] sm:$0xff]  }
 0x2b7   :  { %3444 = vmatmul.mubr.bf16.vlgmr.msra.gmra.mrb[12].mxu0 %v6271_v63  ;;  %v5652_v63 = vld [vmem:[#allocation6 + $0x37c] ss:$12 sps:$4 sm:$0xff]  }
 0x2b8   :  { %v2550_v45 = vpack.c.bf16 %v2545_v44, %v2540_v43  ;;  %3455 = vmatpush1.bf16.msra.mxu0 %v5634_v40  ;;  %3486 = vmatprep.mubr.bf16.mxu0 %v6010_v17  ;;  %v5732_v40 = vld [vmem:[#allocation12] sm:$0xff]   ;;  %v5734_v43 = vld [vmem:[#allocation12 + $0x8] sm:$0xff]   ;;  %v5735_v44 = vld [vmem:[#allocation12 + $0x50] sm:$0xff]  }
 0x2b9   :  { %3456 = vmatprep.subr.bf16.mxu0 %v5640_v42  ;;  %v5733_v42 = vld [vmem:[#allocation12 + $0x48] sm:$0xff]  }
 0x2ba   :  { %5001 = vmatmul.mubr.bf16.vlgmr.msra.gmra.mrb[20].mxu1 %v2550_v45 }
 0x2bb   :  { %3930 = vmatpush1.bf16.msra.mxu1 %v5659_v57 }
 0x2bc   :  { %3457 = vmatpush1.bf16.msra.mxu0 %v5638_v46  ;;  %3931 = vmatprep.subr.bf16.mxu1 %v5664_v41  ;;  %v5737_v46 = vld [vmem:[#allocation12 + $0x58] sm:$0xff]  }
 0x2bd   :  { %3458 = vmatprep.subr.bf16.mxu0 %v5643_v47  ;;  %v5738_v47 = vld [vmem:[#allocation12 + $0x18] sm:$0xff]  }
 0x2bf   :  { %3932 = vmatpush1.bf16.msra.mxu1 %v5662_v58 }
 0x2c0   :  { %3459 = vmatpush1.bf16.msra.mxu0 %v5641_v48  ;;  %3933 = vmatprep.subr.bf16.mxu1 %v5667_v59  ;;  %v5739_v48 = vld [vmem:[#allocation12 + $0x60] sm:$0xff]  }
 0x2c1   :  { %3460 = vmatprep.subr.bf16.mxu0 %v5646_v49  ;;  %v5740_v49 = vld [vmem:[#allocation12 + $0x20] sm:$0xff]  }
 0x2c3   :  { %3934 = vmatpush1.bf16.msra.mxu1 %v5665_v60 }
 0x2c4   :  { %3461 = vmatpush1.bf16.msra.mxu0 %v5644_v50  ;;  %3935 = vmatprep.subr.bf16.mxu1 %v5670_v61  ;;  %v2711_v50 = vld [vmem:[#allocation7] sm:$0x7] }
 0x2c5   :  { %3462 = vmatprep.subr.bf16.mxu0 %v5649_v51  ;;  %v5741_v51 = vld [vmem:[#allocation12 + $0x68] sm:$0xff]  }
 0x2c7   :  { %3936 = vmatpush1.bf16.msra.mxu1 %v5668_v62 }
 0x2c8   :  { %3463 = vmatpush1.bf16.msra.mxu0 %v5647_v52  ;;  %3937 = vmatprep.subr.bf16.mxu1 %v5673_v0  ;;  %v2724_v52 = vrot.slane %v2711_v50, %v521_v31 }
 0x2c9   :  { %3464 = vmatprep.subr.bf16.mxu0 %v5652_v63 }
 0x2cb   :  { %3938 = vmatpush1.bf16.msra.mxu1 %v5671_v1 }
 0x2cc   :  { %3465 = vmatpush1.bf16.msra.mxu0 %v5650_v53  ;;  %3939 = vmatprep.subr.bf16.mxu1 %v5676_v2 }
 0x2cd   :  { %3466 = vmatprep.subr.bf16.mxu0 %v5655_v54 }
 0x2cf   :  { %3940 = vmatpush1.bf16.msra.mxu1 %v5674_v3  ;;  %v2716_v3 = vrot.slane %v2711_v50, %v6254_v30 }
 0x2d0   :  { %3467 = vmatpush1.bf16.msra.mxu0 %v5653_v32  ;;  %3941 = vmatprep.subr.bf16.mxu1 %v5679_v4  ;;  %v2720_v4 = vrot.slane %v2711_v50, %v6260_v33 }
 0x2d1   :  { %3468 = vmatprep.subr.bf16.mxu0 %v5658_v55 }
 0x2d3   :  { %3942 = vmatpush1.bf16.msra.mxu1 %v5677_v5 }
 0x2d4   :  { %3469 = vmatpush1.bf16.msra.mxu0 %v5656_v56  ;;  %3943 = vmatprep.subr.bf16.mxu1 %v5682_v7 }
 0x2d5   :  { %4933 = vmatprep.subr.bf16.mxu0 %v5731_v39  ;;  %v5730_v39 = vld [vmem:[#allocation9 + $0x174] ss:$8 sps:$4 sm:$0xff]  }
 0x2d7   :  { %3487 = vmatmul.mubr.bf16.vlgmr.msra.gmra.mrb[12].mxu0 %v2550_v45  ;;  %3944 = vmatpush1.bf16.msra.mxu1 %v5680_v8  ;;  %v5736_v45 = vld [vmem:[#allocation12 + $0x10] sm:$0xff]  }
 0x2d8   :  { %3945 = vmatprep.subr.bf16.mxu1 %v5685_v9  ;;  %4934 = vmatpush3.bf16.msra.mxu0 %v5732_v40  ;;  %v5728_v40 = vld [vmem:[#allocation9 + $0x170] ss:$8 sps:$4 sm:$0xff]  }
 0x2d9   :  { %4935 = vmatprep.subr.bf16.mxu0 %v5733_v42  ;;  %v5742_v42 = vld [vmem:[#allocation12 + $0x28] sm:$0xff]  }
 0x2db   :  { %3946 = vmatpush1.bf16.msra.mxu1 %v5683_v10 }
 0x2dc   :  { %3947 = vmatprep.subr.bf16.mxu1 %v5688_v11  ;;  %4936 = vmatpush3.bf16.msra.mxu0 %v5734_v43  ;;  %v5743_v43 = vld [vmem:[#allocation12 + $0x70] sm:$0xff]  }
 0x2dd   :  { %4937 = vmatprep.subr.bf16.mxu0 %v5735_v44  ;;  %v5744_v44 = vld [vmem:[#allocation12 + $0x30] sm:$0xff]  }
 0x2df   :  { %3948 = vmatpush1.bf16.msra.mxu1 %v5686_v12 }
 0x2e0   :  { %3949 = vmatprep.subr.bf16.mxu1 %v5691_v13  ;;  %4938 = vmatpush3.bf16.msra.mxu0 %v5736_v45  ;;  %v5745_v45 = vld [vmem:[#allocation12 + $0x78] sm:$0xff]  }
 0x2e1   :  { %4939 = vmatprep.subr.bf16.mxu0 %v5737_v46  ;;  %v5746_v46 = vld [vmem:[#allocation12 + $0x38] sm:$0xff]  }
 0x2e3   :  { %3950 = vmatpush1.bf16.msra.mxu1 %v5689_v14 }
 0x2e4   :  { %3951 = vmatprep.subr.bf16.mxu1 %v5694_v16  ;;  %4940 = vmatpush3.bf16.msra.mxu0 %v5738_v47  ;;  %v3677_v47 = vld [vmem:[#allocation10] sm:$0x3] }
 0x2e5   :  { %4941 = vmatprep.subr.bf16.mxu0 %v5739_v48  ;;  %v3682_v48 = vrot.slane %v3677_v47, %v6254_v30  ;;  %v5748_v30 = vld [vmem:[#allocation15 + $0x8] sm:$0xff]  }
 0x2e7   :  { %3952 = vmatpush1.bf16.msra.mxu1 %v5692_v18 }
 0x2e8   :  { %3953 = vmatprep.subr.bf16.mxu1 %v5697_v19  ;;  %4942 = vmatpush3.bf16.msra.mxu0 %v5740_v49  ;;  %v3686_v49 = vrot.slane %v3677_v47, %v6260_v33  ;;  %v5749_v33 = vld [vmem:[#allocation15 + $0x10] sm:$0xff]  }
 0x2e9   :  { %4943 = vmatprep.subr.bf16.mxu0 %v5741_v51 }
 0x2eb   :  { %3954 = vmatpush1.bf16.msra.mxu1 %v5695_v20 }
 0x2ec   :  { %3955 = vmatprep.subr.bf16.mxu1 %v5700_v21  ;;  %4944 = vmatpush3.bf16.msra.mxu0 %v5742_v42 }
 0x2ed   :  { %4945 = vmatprep.subr.bf16.mxu0 %v5743_v43 }
 0x2ef   :  { %3956 = vmatpush1.bf16.msra.mxu1 %v5698_v22  ;;  %v5707_v22 = vld [vmem:[#allocation9 + $0x100] ss:$8 sps:$4 sm:$0xff]  }
 0x2f0   :  { %3957 = vmatprep.subr.bf16.mxu1 %v5703_v23  ;;  %v5712_v23 = vld [vmem:[#allocation9 + $0x114] ss:$8 sps:$4 sm:$0xff]   ;;  %4946 = vmatpush3.bf16.msra.mxu0 %v5744_v44 }
 0x2f1   :  { %4947 = vmatprep.subr.bf16.mxu0 %v5745_v45 }
 0x2f3   :  { %3958 = vmatpush1.bf16.msra.mxu1 %v5701_v24  ;;  %v5710_v24 = vld [vmem:[#allocation9 + $0x110] ss:$8 sps:$4 sm:$0xff]  }
 0x2f4   :  { %3959 = vmatprep.subr.bf16.mxu1 %v5706_v25  ;;  %v5715_v25 = vld [vmem:[#allocation9 + $0x124] ss:$8 sps:$4 sm:$0xff]   ;;  %4948 = vmatpush3.bf16.msra.mxu0 %v5746_v46 }
 0x2f5   :  { %5004 = vmatprep.subr.bf16.mxu0 %v6011_v15 }
 0x2f7   :  { %3960 = vmatpush1.bf16.msra.mxu1 %v5704_v26  ;;  %v5713_v26 = vld [vmem:[#allocation9 + $0x120] ss:$8 sps:$4 sm:$0xff]  }
 0x2f8   :  { %3972 = vmatprep.subr.bf16.mxu1 %v5709_v27  ;;  %v5718_v27 = vld [vmem:[#allocation9 + $0x134] ss:$8 sps:$4 sm:$0xff]  }
 0x34a   :  { %v4896_v28 = vpop.f32.mrb[12].mxu1 }
 0x34b   :  { %v4897_v34 = vpop.f32.mrb[13].mxu1 }
 0x34c   :  { %v4898_v35 = vadd.f32 %v4897_v34, %v4896_v28  ;;  %v4899_v36 = vpop.f32.mrb[14].mxu1  ;;  %v5716_v28 = vld [vmem:[#allocation9 + $0x130] ss:$8 sps:$4 sm:$0xff]   ;;  %v5721_v34 = vld [vmem:[#allocation9 + $0x144] ss:$8 sps:$4 sm:$0xff]  }
 0x34d   :  { %v4900_v37 = vpop.f32.mrb[15].mxu1 }
 0x34e   :  { %v4901_v38 = vadd.f32 %v4900_v37, %v4899_v36  ;;  %v3532_v54 = vadd.f32 %v4898_v35, %v2724_v52  ;;  %v5719_v35 = vld [vmem:[#allocation9 + $0x140] ss:$8 sps:$4 sm:$0xff]   ;;  %v5724_v36 = vld [vmem:[#allocation9 + $0x154] ss:$8 sps:$4 sm:$0xff]   ;;  %v5722_v37 = vld [vmem:[#allocation9 + $0x150] ss:$8 sps:$4 sm:$0xff]  }
 0x350   :  { %v3535_v57 = vadd.f32 %v4901_v38, %v2724_v52  ;;  %v5727_v38 = vld [vmem:[#allocation9 + $0x164] ss:$8 sps:$4 sm:$0xff]  }
 0x36a   :  { %v4918_v63 = vpop.f32.mrb[16].mxu1 }
 0x36b   :  { %v4919_v53 = vpop.f32.mrb[17].mxu1 }
 0x36c   :  { %v4920_v32 = vadd.f32 %v4919_v53, %v4918_v63  ;;  %v4921_v55 = vpop.f32.mrb[18].mxu1 }
 0x36d   :  { %v4922_v56 = vpop.f32.mrb[19].mxu1 }
 0x36e   :  { %v4923_v6 = vadd.f32 %v4922_v56, %v4921_v55  ;;  %v3573_v41 = vadd.f32 %v4920_v32, %v3532_v54 }
 0x370   :  { %v3576_v58 = vadd.f32 %v4923_v6, %v3535_v57 }
 0x38d   :  { %v3613_v59 = vpop.f32.mrb[20].mxu1 }
 0x38e   :  { %v3614_v60 = vadd.f32 %v3613_v59, %v3573_v41  ;;  %v5002_v61 = vpop.f32.mrb[21].mxu1 }
 0x38f   :  { %v3616_v62 = vpop.f32.mrb[22].mxu1  ;;  %v5750_v61 = vld [vmem:[#allocation15 + $0x18] sm:$0xff]  }
 0x390   :  { %v3617_v0 = vadd.f32 %v3616_v62, %v3576_v58  ;;  %v5003_v1 = vpop.f32.mrb[23].mxu1  ;;  %v3622_v29 = vmax.f32 %v3614_v60, 0.0  ;;  %v5747_v60 = vld [vmem:[#allocation15] sm:$0xff]  }
 0x391   :  { %v5751_v62 = vld [vmem:[#allocation15 + $0x20] sm:$0xff]   ;;  %v5753_v1 = vld [vmem:[#allocation15 + $0x30] sm:$0xff]  }
 0x392   :  { %v3625_v31 = vmax.f32 %v3617_v0, 0.0  ;;  %v5752_v0 = vld [vmem:[#allocation15 + $0x28] sm:$0xff]  }
 0x394   :  { %v3628_v2 = vpack.c.bf16 %v3625_v31, %v3622_v29  ;;  %v5754_v29 = vld [vmem:[#allocation15 + $0x38] sm:$0xff]  }
 0x3aa   :  { %v3488_v5 = vpop.f32.mrb[12].mxu0 }
 0x3ab   :  { %v5032_v7 = vadd.f32 %v3488_v5, %v2716_v3  ;;  %v3490_v8 = vpop.f32.mrb[13].mxu0 }
 0x3ac   :  { %v5033_v9 = vadd.f32 %v3490_v8, %v2720_v4  ;;  %v3492_v10 = vpop.f32.mrb[14].mxu0 }
 0x3ad   :  { %v5034_v11 = vadd.f32 %v3492_v10, %v2716_v3  ;;  %v3494_v12 = vpop.f32.mrb[15].mxu0  ;;  %v3620_v14 = vmax.f32 %v5032_v7, 0.0 }
 0x3ae   :  { %v5035_v13 = vadd.f32 %v3494_v12, %v2720_v4  ;;  %v3621_v18 = vmax.f32 %v5033_v9, 0.0 }
 0x3af   :  { %v3623_v16 = vmax.f32 %v5034_v11, 0.0 }
 0x3b0   :  { %v3624_v19 = vmax.f32 %v5035_v13, 0.0 }
 0x3b1   :  { %v3626_v20 = vpack.c.bf16 %v3623_v16, %v3620_v14  ;;  %v4796_v14 = vld [vmem:[#allocation16] ss:$0 sm:$0xff] }
 0x3b2   :  { %v3627_v21 = vpack.c.bf16 %v3624_v19, %v3621_v18 }
 0x3b4   :  { %3961 = vmatprep.mubr.bf16.mxu1 %v3627_v21 }
 0x3b5   :  { %3962 = vmatmul.mubr.bf16.vlgmr.msra.gmra.mrb[24].mxu1 %v3626_v20 }
 0x3b6   :  { %3973 = vmatpush1.bf16.msra.mxu1 %v5707_v22  ;;  %4004 = vmatprep.mubr.bf16.mxu1 %v6010_v17  ;;  %v5725_v17 = vld [vmem:[#allocation9 + $0x160] ss:$8 sps:$4 sm:$0xff]  }
 0x3b7   :  { %3974 = vmatprep.subr.bf16.mxu1 %v5712_v23 }
 0x3ba   :  { %3975 = vmatpush1.bf16.msra.mxu1 %v5710_v24 }
 0x3bb   :  { %3976 = vmatprep.subr.bf16.mxu1 %v5715_v25 }
 0x3be   :  { %3977 = vmatpush1.bf16.msra.mxu1 %v5713_v26 }
 0x3bf   :  { %3978 = vmatprep.subr.bf16.mxu1 %v5718_v27 }
 0x3c2   :  { %3979 = vmatpush1.bf16.msra.mxu1 %v5716_v28 }
 0x3c3   :  { %3980 = vmatprep.subr.bf16.mxu1 %v5721_v34 }
 0x3c6   :  { %3981 = vmatpush1.bf16.msra.mxu1 %v5719_v35 }
 0x3c7   :  { %3982 = vmatprep.subr.bf16.mxu1 %v5724_v36 }
 0x3ca   :  { %3983 = vmatpush1.bf16.msra.mxu1 %v5722_v37 }
 0x3cb   :  { %3984 = vmatprep.subr.bf16.mxu1 %v5727_v38 }
 0x3ce   :  { %3985 = vmatpush1.bf16.msra.mxu1 %v5725_v17 }
 0x3cf   :  { %3986 = vmatprep.subr.bf16.mxu1 %v5730_v39 }
 0x3d2   :  { %3987 = vmatpush1.bf16.msra.mxu1 %v5728_v40 }
 0x3d5   :  { %4005 = vmatmul.mubr.bf16.vlgmr.msra.gmra.mrb[24].mxu1 %v3628_v2  ;;  %v4779_v2 = vld [vmem:[#allocation13] ss:$0 sm:$0xff] }
 0x4a8   :  { %v4006_v50 = vpop.f32.mrb[24].mxu1 }
 0x4a9   :  { %v5036_v51 = vadd.f32 %v4006_v50, %v3682_v48  ;;  %v4008_v52 = vpop.f32.mrb[25].mxu1 }
 0x4aa   :  { %v5037_v63 = vadd.f32 %v4008_v52, %v3686_v49  ;;  %v4010_v53 = vpop.f32.mrb[26].mxu1 }
 0x4ab   :  { %v5038_v54 = vadd.f32 %v4010_v53, %v3682_v48  ;;  %v4012_v32 = vpop.f32.mrb[27].mxu1  ;;  %v4015_v56 = vmax.f32 %v5036_v51, 0.0 }
 0x4ac   :  { %v5039_v55 = vadd.f32 %v4012_v32, %v3686_v49  ;;  %v4016_v6 = vmax.f32 %v5037_v63, 0.0 }
 0x4ad   :  { %v4017_v57 = vmax.f32 %v5038_v54, 0.0 }
 0x4ae   :  { %v4018_v41 = vmax.f32 %v5039_v55, 0.0 }
 0x4af   :  { %v4019_v58 = vpack.c.bf16 %v4017_v57, %v4015_v56 }
 0x4b0   :  { %v4020_v59 = vpack.c.bf16 %v4018_v41, %v4016_v6 }
 0x4b2   :  { %4188 = vmatprep.mubr.bf16.mxu0 %v4020_v59 }
 0x4b3   :  { %4189 = vmatmul.mubr.bf16.vlgmr.msra.gmra.mrb[16].mxu0 %v4019_v58 }
 0x4b4   :  { %5005 = vmatpush3.bf16.msra.mxu0 %v5747_v60  ;;  %5020 = vmatprep.mubr.msk.bf16.mxu0 %vm6012_vm0, %v6011_v15 }
 0x4b5   :  { %5006 = vmatprep.subr.bf16.mxu0 %v6011_v15 }
 0x4b8   :  { %5007 = vmatpush3.bf16.msra.mxu0 %v5748_v30 }
 0x4b9   :  { %5008 = vmatprep.subr.bf16.mxu0 %v6011_v15 }
 0x4bc   :  { %5009 = vmatpush3.bf16.msra.mxu0 %v5749_v33 }
 0x4bd   :  { %5010 = vmatprep.subr.bf16.mxu0 %v6011_v15 }
 0x4c0   :  { %5011 = vmatpush3.bf16.msra.mxu0 %v5750_v61 }
 0x4c1   :  { %5012 = vmatprep.subr.bf16.mxu0 %v6011_v15 }
 0x4c4   :  { %5013 = vmatpush3.bf16.msra.mxu0 %v5751_v62 }
 0x4c5   :  { %5014 = vmatprep.subr.bf16.mxu0 %v6011_v15 }
 0x4c8   :  { %5015 = vmatpush3.bf16.msra.mxu0 %v5752_v0 }
 0x4c9   :  { %5016 = vmatprep.subr.bf16.mxu0 %v6011_v15 }
 0x4cc   :  { %5017 = vmatpush3.bf16.msra.mxu0 %v5753_v1 }
 0x4cd   :  { %5018 = vmatprep.subr.bf16.mxu0 %v6011_v15 }
 0x4d0   :  { %5019 = vmatpush3.bf16.msra.mxu0 %v5754_v29 }
 0x586   :  { %v4949_v31 = vpop.f32.mrb[16].mxu0 }
 0x587   :  { %v4950_v3 = vpop.f32.mrb[17].mxu0 }
 0x588   :  { %v4951_v4 = vadd.f32 %v4950_v3, %v4949_v31  ;;  %v4952_v5 = vpop.f32.mrb[18].mxu0 }
 0x589   :  { %v4953_v7 = vpop.f32.mrb[19].mxu0 }
 0x58a   :  { %v4191_v8 = vadd.f32 %v4951_v4, %v4779_v2  ;;  %v4954_v9 = vadd.f32 %v4953_v7, %v4952_v5 }
 0x58c   :  { %v4194_v10 = vadd.f32 %v4954_v9, %v4779_v2  ;;  %v4197_v11 = vmax.f32 %v4191_v8, 0.0 }
 0x58e   :  { %v4198_v12 = vmax.f32 %v4194_v10, 0.0 }
 0x590   :  { %v4199_v13 = vpack.c.bf16 %v4198_v12, %v4197_v11 }
 0x592   :  { %5021 = vmatmul.mubr.bf16.vlgmr.msra.gmra.mrb[20].mxu0 %v4199_v13 }
 0x665   :  { %v4305_v16 = vpop.f32.mrb[20].mxu0 }
 0x666   :  { %v4306_v18 = vadd.f32 %v4796_v14, %v4305_v16  ;;  %v5022_v19 = vpop.f32.mrb[21].mxu0 }
 0x667   :  { %v4308_v15 = vpop.f32.mrb[22].mxu0 }
 0x668   :  { %4312 = vst [vmem:[%s6328_s11] sm:$0xff] %v4306_v18  ;;  %v4309_v20 = vadd.f32 %v4796_v14, %v4308_v15  ;;  %v5023_v21 = vpop.f32.mrb[23].mxu0 }
 0x66a   :  { %4313 = vst [vmem:[%s6328_s11 + $0x8] sm:$0xff] %v4309_v20 }
 0x66b   :  { %4318 = vsyncpa [#allocation3], 1 }
 0x66c   :  { %4319 = vsyncpa [#allocation5], 1 }
 0x66d   :  { %4320 = vsyncpa [#allocation8], 1 }
 0x66e   :  { %4321 = vsyncpa [#allocation11], 1 }
 0x66f   :  { %4322 = vsyncpa [#allocation14], 1 }
 0x670   :  { %4323 = vsyncpa [#allocation17], 1 }

</bundles_post_ra>
